<compile_context>
chip_gen: v5e
topology: v5e:2x2
jax: 0.10.0
libtpu: 0.0.40
codegen_flags: <defaults>
</compile_context>

<pallas_src>
import jax
import jax.numpy as jnp
import numpy as np
from jax import lax
from jax.experimental import pallas as pl
from jax.experimental.pallas import tpu as pltpu


def _make_kernel(num_layers: int, hidden_size: int, batch_p: int, t_blk: int,
                 seq_len: int):
    H = hidden_size
    B = batch_p
    needs_mask = (seq_len % t_blk) != 0

    def kernel(*refs):
        # inputs
        x_ref, hx0_ref, cx0_ref = refs[0:3]
        w_refs = refs[3:3 + 3 * num_layers]
        # outputs (hxo/cxo have constant block index -> resident carries)
        out_ref, hxo_ref, cxo_ref = refs[3 + 3 * num_layers:6 + 3 * num_layers]
        # scratch: per-layer input projection for the whole time block
        (proj_scr,) = refs[6 + 3 * num_layers:]

        blk = pl.program_id(0)
        t_base = blk * t_blk

        @pl.when(blk == 0)
        def _init():
            hxo_ref[...] = hx0_ref[...]
            cxo_ref[...] = cx0_ref[...]

        for layer in range(num_layers):
            # hoisted per-layer loads (once per grid step, not per timestep)
            w_ih = w_refs[3 * layer][...]       # (D_l, 4H)
            w_hh = w_refs[3 * layer + 1][...]   # (H,   4H)
            bias = w_refs[3 * layer + 2][...]   # (1,   4H)  (= b_ih + b_hh)

            # One big MXU matmul: input projection for ALL timesteps in block.
            layer_in = x_ref[...] if layer == 0 else out_ref[...]
            proj_scr[...] = (
                jnp.dot(layer_in, w_ih, preferred_element_type=jnp.float32) + bias
            )

            h0 = hxo_ref[layer]                 # (B, H)
            c0 = cxo_ref[layer]                 # (B, H)

            def step(t, carry, w_hh=w_hh):
                h, c = carry
                row = pl.multiple_of(t * B, B)  # B is a multiple of 8
                gates = proj_scr[pl.ds(row, B), :] + jnp.dot(
                    h, w_hh, preferred_element_type=jnp.float32)  # (B, 4H)
                i_g = jax.nn.sigmoid(gates[:, 0 * H:1 * H])
                f_g = jax.nn.sigmoid(gates[:, 1 * H:2 * H])
                g_g = jnp.tanh(gates[:, 2 * H:3 * H])
                o_g = jax.nn.sigmoid(gates[:, 3 * H:4 * H])
                c_new = f_g * c + i_g * g_g
                h_new = o_g * jnp.tanh(c_new)
                if needs_mask:  # keep carry frozen on padded timesteps
                    valid = (t_base + t) < seq_len
                    h_new = jnp.where(valid, h_new, h)
                    c_new = jnp.where(valid, c_new, c)
                out_ref[pl.ds(row, B), :] = h_new
                return h_new, c_new

            h_f, c_f = lax.fori_loop(0, t_blk, step, (h0, c0), unroll=True)
            hxo_ref[layer] = h_f
            cxo_ref[layer] = c_f

    return kernel


def cellwise_lstm_forward(x, hx, cx, params, *, t_blk: int = 4):
    """x: (batch, seq, D); hx, cx: (L, batch, H); params: list of (w_ih_t, w_hh_t, bias)."""
    batch, seq, D = x.shape
    L, _, H = hx.shape

    # Pad batch to a multiple of 8 sublanes; pad seq to a multiple of t_blk.
    B = max(8, ((batch + 7) // 8) * 8)
    n_blk = pl.cdiv(seq, t_blk)
    s_pad = n_blk * t_blk

    xs = jnp.transpose(x, (1, 0, 2))                              # (seq, batch, D)
    xs = jnp.pad(xs, ((0, s_pad - seq), (0, B - batch), (0, 0)))  # (s_pad, B, D)
    x2d = xs.reshape(s_pad * B, D)                                # time-major, 2D

    hx_p = jnp.pad(hx, ((0, 0), (0, B - batch), (0, 0)))          # (L, B, H)
    cx_p = jnp.pad(cx, ((0, 0), (0, B - batch), (0, 0)))

    in_specs = [
        pl.BlockSpec((t_blk * B, D), lambda i: (i, 0)),
        pl.BlockSpec((L, B, H), lambda i: (0, 0, 0)),
        pl.BlockSpec((L, B, H), lambda i: (0, 0, 0)),
    ]
    flat_params = []
    for (w_ih_t, w_hh_t, bias) in params:
        d_l = w_ih_t.shape[0]
        in_specs.append(pl.BlockSpec((d_l, 4 * H), lambda i: (0, 0)))
        in_specs.append(pl.BlockSpec((H, 4 * H), lambda i: (0, 0)))
        in_specs.append(pl.BlockSpec((1, 4 * H), lambda i: (0, 0)))
        flat_params += [w_ih_t, w_hh_t, bias]

    out_shape = (
        jax.ShapeDtypeStruct((s_pad * B, H), jnp.float32),
        jax.ShapeDtypeStruct((L, B, H), jnp.float32),
        jax.ShapeDtypeStruct((L, B, H), jnp.float32),
    )
    out_specs = (
        pl.BlockSpec((t_blk * B, H), lambda i: (i, 0)),
        pl.BlockSpec((L, B, H), lambda i: (0, 0, 0)),   # resident h carry
        pl.BlockSpec((L, B, H), lambda i: (0, 0, 0)),   # resident c carry
    )

    out2d, hx_out, cx_out = pl.pallas_call(
        _make_kernel(L, H, B, t_blk, seq),
        out_shape=out_shape,
        grid_spec=pltpu.PrefetchScalarGridSpec(
            num_scalar_prefetch=0,
            grid=(n_blk,),
            in_specs=in_specs,
            out_specs=out_specs,
            scratch_shapes=[
                pltpu.VMEM((t_blk * B, 4 * H), jnp.float32),   # block projection
            ],
        ),
        compiler_params=pltpu.CompilerParams(
            dimension_semantics=("arbitrary",),   # time axis carries state
            vmem_limit_bytes=32 * 1024 * 1024,    # > v5e's 16 MiB default
        ),
    )(x2d, hx_p, cx_p, *flat_params)

    out = out2d.reshape(s_pad, B, H)[:seq, :batch]      # drop seq/batch padding
    new_output = jnp.transpose(out, (1, 0, 2))          # (batch, seq, H)
    return new_output, (hx_out[:, :batch], cx_out[:, :batch])


def _ref_forward(x, hx, cx, params):
    """Pure-JAX reference mirroring the PyTorch forward (dropout = identity)."""
    batch, seq, _ = x.shape
    L, _, H = hx.shape
    h = [hx[l] for l in range(L)]
    c = [cx[l] for l in range(L)]
    outs = []
    for t in range(seq):
        inp = x[:, t, :]
        for l in range(L):
            w_ih_t, w_hh_t, bias = params[l]
            gates = inp @ w_ih_t + h[l] @ w_hh_t + bias
            i_g = jax.nn.sigmoid(gates[:, 0 * H:1 * H])
            f_g = jax.nn.sigmoid(gates[:, 1 * H:2 * H])
            g_g = jnp.tanh(gates[:, 2 * H:3 * H])
            o_g = jax.nn.sigmoid(gates[:, 3 * H:4 * H])
            c[l] = f_g * c[l] + i_g * g_g
            h[l] = o_g * jnp.tanh(c[l])
            inp = h[l]
        outs.append(inp)
    return jnp.stack(outs, axis=1), (jnp.stack(h, 0), jnp.stack(c, 0))


if __name__ == "__main__":
    batch, seq, input_size, hidden_size, num_layers = 2, 8, 16, 32, 2

    key = jax.random.PRNGKey(0)
    keys = jax.random.split(key, 3 + 4 * num_layers)

    x = jax.random.normal(keys[0], (batch, seq, input_size), dtype=jnp.float32)
    hx = jax.random.normal(keys[1], (num_layers, batch, hidden_size), dtype=jnp.float32)
    cx = jax.random.normal(keys[2], (num_layers, batch, hidden_size), dtype=jnp.float32)

    # Deterministic parameter init (PyTorch LSTMCell-style uniform(-1/sqrt(H), 1/sqrt(H))).
    stdv = 1.0 / np.sqrt(hidden_size)
    params = []
    for layer in range(num_layers):
        d_l = input_size if layer == 0 else hidden_size
        k = 3 + 4 * layer
        w_ih = jax.random.uniform(keys[k + 0], (4 * hidden_size, d_l),
                                  minval=-stdv, maxval=stdv, dtype=jnp.float32)
        w_hh = jax.random.uniform(keys[k + 1], (4 * hidden_size, hidden_size),
                                  minval=-stdv, maxval=stdv, dtype=jnp.float32)
        b_ih = jax.random.uniform(keys[k + 2], (4 * hidden_size,),
                                  minval=-stdv, maxval=stdv, dtype=jnp.float32)
        b_hh = jax.random.uniform(keys[k + 3], (4 * hidden_size,),
                                  minval=-stdv, maxval=stdv, dtype=jnp.float32)
        # pre-transpose for the kernel; fold the two biases together
        params.append((w_ih.T, w_hh.T, (b_ih + b_hh).reshape(1, 4 * hidden_size)))

    # t_blk=4 -> grid of 2 time blocks: exercises the cross-block state carry.
    out, (hx_out, cx_out) = cellwise_lstm_forward(x, hx, cx, params, t_blk=4)
    jax.block_until_ready((out, hx_out, cx_out))

    out_ref, (hx_ref, cx_ref) = _ref_forward(x, hx, cx, params)
    np.testing.assert_allclose(np.asarray(out), np.asarray(out_ref), rtol=1e-5, atol=1e-5)
    np.testing.assert_allclose(np.asarray(hx_out), np.asarray(hx_ref), rtol=1e-5, atol=1e-5)
    np.testing.assert_allclose(np.asarray(cx_out), np.asarray(cx_ref), rtol=1e-5, atol=1e-5)

    print("KERNEL_OK")
</pallas_src>

<mosaic_0001>
module attributes {stable_mosaic.version = 11 : i64} {
  func.func @kernel(%arg0: i32, %arg1: memref<32x16xf32, #tpu.memory_space<vmem>>, %arg2: memref<2x8x32xf32, #tpu.memory_space<vmem>>, %arg3: memref<2x8x32xf32, #tpu.memory_space<vmem>>, %arg4: memref<16x128xf32, #tpu.memory_space<vmem>>, %arg5: memref<32x128xf32, #tpu.memory_space<vmem>>, %arg6: memref<1x128xf32, #tpu.memory_space<vmem>>, %arg7: memref<32x128xf32, #tpu.memory_space<vmem>>, %arg8: memref<32x128xf32, #tpu.memory_space<vmem>>, %arg9: memref<1x128xf32, #tpu.memory_space<vmem>>, %arg10: memref<32x32xf32, #tpu.memory_space<vmem>>, %arg11: memref<2x8x32xf32, #tpu.memory_space<vmem>>, %arg12: memref<2x8x32xf32, #tpu.memory_space<vmem>>, %arg13: memref<32x128xf32, #tpu.memory_space<vmem>>) attributes {dimension_semantics = [#tpu.dimension_semantics<arbitrary>], iteration_bounds = array<i64: 2>, scalar_prefetch = 0 : i64, scratch_operands = 1 : i64, tpu.core_type = #tpu.core_type<tc>, window_params = [{transform_indices = @transform_0, window_bounds = array<i64: 32, 16>}, {pipeline_mode = #tpu.pipeline_mode<synchronous>, transform_indices = @transform_1, window_bounds = array<i64: 2, 8, 32>}, {pipeline_mode = #tpu.pipeline_mode<synchronous>, transform_indices = @transform_2, window_bounds = array<i64: 2, 8, 32>}, {pipeline_mode = #tpu.pipeline_mode<synchronous>, transform_indices = @transform_3, window_bounds = array<i64: 16, 128>}, {pipeline_mode = #tpu.pipeline_mode<synchronous>, transform_indices = @transform_4, window_bounds = array<i64: 32, 128>}, {pipeline_mode = #tpu.pipeline_mode<synchronous>, transform_indices = @transform_5, window_bounds = array<i64: 1, 128>}, {pipeline_mode = #tpu.pipeline_mode<synchronous>, transform_indices = @transform_6, window_bounds = array<i64: 32, 128>}, {pipeline_mode = #tpu.pipeline_mode<synchronous>, transform_indices = @transform_7, window_bounds = array<i64: 32, 128>}, {pipeline_mode = #tpu.pipeline_mode<synchronous>, transform_indices = @transform_8, window_bounds = array<i64: 1, 128>}, {transform_indices = @transform_9, window_bounds = array<i64: 32, 32>}, {pipeline_mode = #tpu.pipeline_mode<synchronous>, transform_indices = @transform_10, window_bounds = array<i64: 2, 8, 32>}, {pipeline_mode = #tpu.pipeline_mode<synchronous>, transform_indices = @transform_11, window_bounds = array<i64: 2, 8, 32>}]} {
    %c0_i32 = arith.constant 0 : i32
    %0 = arith.cmpi eq, %arg0, %c0_i32 : i32
    %1 = arith.extui %0 : i1 to i32
    %c0_i32_0 = arith.constant 0 : i32
    %2 = arith.cmpi ne, %1, %c0_i32_0 : i32
    scf.if %2 {
      %c0_105 = arith.constant 0 : index
      %c0_106 = arith.constant 0 : index
      %c0_107 = arith.constant 0 : index
      %303 = vector.load %arg2[%c0_105, %c0_106, %c0_107] : memref<2x8x32xf32, #tpu.memory_space<vmem>>, vector<2x8x32xf32>
      %c0_108 = arith.constant 0 : index
      %c0_109 = arith.constant 0 : index
      %c0_110 = arith.constant 0 : index
      %304 = vector.load %arg11[%c0_108, %c0_109, %c0_110] : memref<2x8x32xf32, #tpu.memory_space<vmem>>, vector<2x8x32xf32>
      tpu.vector_store %arg11[%c0_108, %c0_109, %c0_110], %303 {strides = array<i32>} : memref<2x8x32xf32, #tpu.memory_space<vmem>>, vector<2x8x32xf32>,
      %c0_111 = arith.constant 0 : index
      %c0_112 = arith.constant 0 : index
      %c0_113 = arith.constant 0 : index
      %305 = vector.load %arg3[%c0_111, %c0_112, %c0_113] : memref<2x8x32xf32, #tpu.memory_space<vmem>>, vector<2x8x32xf32>
      %c0_114 = arith.constant 0 : index
      %c0_115 = arith.constant 0 : index
      %c0_116 = arith.constant 0 : index
      %306 = vector.load %arg12[%c0_114, %c0_115, %c0_116] : memref<2x8x32xf32, #tpu.memory_space<vmem>>, vector<2x8x32xf32>
      tpu.vector_store %arg12[%c0_114, %c0_115, %c0_116], %305 {strides = array<i32>} : memref<2x8x32xf32, #tpu.memory_space<vmem>>, vector<2x8x32xf32>,
    } else {
    }
    %c0 = arith.constant 0 : index
    %c0_1 = arith.constant 0 : index
    %3 = vector.load %arg4[%c0, %c0_1] : memref<16x128xf32, #tpu.memory_space<vmem>>, vector<16x128xf32>
    %c0_2 = arith.constant 0 : index
    %c0_3 = arith.constant 0 : index
    %4 = vector.load %arg5[%c0_2, %c0_3] : memref<32x128xf32, #tpu.memory_space<vmem>>, vector<32x128xf32>
    %c0_4 = arith.constant 0 : index
    %c0_5 = arith.constant 0 : index
    %5 = vector.load %arg6[%c0_4, %c0_5] : memref<1x128xf32, #tpu.memory_space<vmem>>, vector<1x128xf32>
    %c0_6 = arith.constant 0 : index
    %c0_7 = arith.constant 0 : index
    %6 = vector.load %arg1[%c0_6, %c0_7] : memref<32x16xf32, #tpu.memory_space<vmem>>, vector<32x16xf32>
    %cst = arith.constant dense<0.000000e+00> : vector<32x128xf32>
    %7 = tpu.matmul %6, %3, %cst {dimension_numbers = #tpu.dot_dimension_numbers<[1], [0], [0], [1], [0, 0, 1, 1], [], []>} : vector<32x16xf32>, vector<16x128xf32>, vector<32x128xf32> -> vector<32x128xf32>
    %8 = vector.broadcast %5 : vector<1x128xf32> to vector<32x128xf32>
    %9 = arith.addf %7, %8 : vector<32x128xf32>
    %c0_8 = arith.constant 0 : index
    %c0_9 = arith.constant 0 : index
    %10 = vector.load %arg13[%c0_8, %c0_9] : memref<32x128xf32, #tpu.memory_space<vmem>>, vector<32x128xf32>
    tpu.vector_store %arg13[%c0_8, %c0_9], %9 {strides = array<i32>} : memref<32x128xf32, #tpu.memory_space<vmem>>, vector<32x128xf32>,
    %c0_10 = arith.constant 0 : index
    %c0_11 = arith.constant 0 : index
    %c0_12 = arith.constant 0 : index
    %11 = vector.load %arg11[%c0_10, %c0_11, %c0_12] : memref<2x8x32xf32, #tpu.memory_space<vmem>>, vector<1x8x32xf32>
    %12 = vector.shape_cast %11 : vector<1x8x32xf32> to vector<8x32xf32>
    %c0_13 = arith.constant 0 : index
    %c0_14 = arith.constant 0 : index
    %c0_15 = arith.constant 0 : index
    %13 = vector.load %arg12[%c0_13, %c0_14, %c0_15] : memref<2x8x32xf32, #tpu.memory_space<vmem>>, vector<1x8x32xf32>
    %14 = vector.shape_cast %13 : vector<1x8x32xf32> to vector<8x32xf32>
    %c0_i32_16 = arith.constant 0 : i32
    %c8_i32 = arith.constant 8 : i32
    %15 = arith.muli %c0_i32_16, %c8_i32 : i32
    %16 = tpu.assume_multiple %15, 8 : i32
    %17 = arith.index_cast %16 : i32 to index
    %c0_17 = arith.constant 0 : index
    %18 = vector.load %arg13[%17, %c0_17] : memref<32x128xf32, #tpu.memory_space<vmem>>, vector<8x128xf32>
    %cst_18 = arith.constant dense<0.000000e+00> : vector<8x128xf32>
    %19 = tpu.matmul %12, %4, %cst_18 {dimension_numbers = #tpu.dot_dimension_numbers<[1], [0], [0], [1], [0, 0, 1, 1], [], []>} : vector<8x32xf32>, vector<32x128xf32>, vector<8x128xf32> -> vector<8x128xf32>
    %20 = arith.addf %18, %19 : vector<8x128xf32>
    %21 = vector.extract_strided_slice %20 {offsets = [0, 0], sizes = [8, 32], strides = [1, 1]} : vector<8x128xf32> to vector<8x32xf32>
    %22 = arith.negf %21 : vector<8x32xf32>
    %23 = math.exp %22 : vector<8x32xf32>
    %cst_19 = arith.constant 1.000000e+00 : f32
    %24 = vector.broadcast %cst_19 : f32 to vector<8x32xf32>
    %25 = arith.addf %24, %23 : vector<8x32xf32>
    %26 = arith.divf %24, %25 : vector<8x32xf32>
    %27 = vector.extract_strided_slice %20 {offsets = [0, 32], sizes = [8, 32], strides = [1, 1]} : vector<8x128xf32> to vector<8x32xf32>
    %28 = arith.negf %27 : vector<8x32xf32>
    %29 = math.exp %28 : vector<8x32xf32>
    %cst_20 = arith.constant 1.000000e+00 : f32
    %30 = vector.broadcast %cst_20 : f32 to vector<8x32xf32>
    %31 = arith.addf %30, %29 : vector<8x32xf32>
    %32 = arith.divf %30, %31 : vector<8x32xf32>
    %33 = vector.extract_strided_slice %20 {offsets = [0, 64], sizes = [8, 32], strides = [1, 1]} : vector<8x128xf32> to vector<8x32xf32>
    %34 = math.tanh %33 : vector<8x32xf32>
    %35 = vector.extract_strided_slice %20 {offsets = [0, 96], sizes = [8, 32], strides = [1, 1]} : vector<8x128xf32> to vector<8x32xf32>
    %36 = arith.negf %35 : vector<8x32xf32>
    %37 = math.exp %36 : vector<8x32xf32>
    %cst_21 = arith.constant 1.000000e+00 : f32
    %38 = vector.broadcast %cst_21 : f32 to vector<8x32xf32>
    %39 = arith.addf %38, %37 : vector<8x32xf32>
    %40 = arith.divf %38, %39 : vector<8x32xf32>
    %41 = arith.mulf %32, %14 : vector<8x32xf32>
    %42 = arith.mulf %26, %34 : vector<8x32xf32>
    %43 = arith.addf %41, %42 : vector<8x32xf32>
    %44 = math.tanh %43 : vector<8x32xf32>
    %45 = arith.mulf %40, %44 : vector<8x32xf32>
    %46 = arith.index_cast %16 : i32 to index
    %c0_22 = arith.constant 0 : index
    %47 = vector.load %arg10[%46, %c0_22] : memref<32x32xf32, #tpu.memory_space<vmem>>, vector<8x32xf32>
    tpu.vector_store %arg10[%46, %c0_22], %45 {strides = array<i32>} : memref<32x32xf32, #tpu.memory_space<vmem>>, vector<8x32xf32>,
    %c1_i32 = arith.constant 1 : i32
    %c8_i32_23 = arith.constant 8 : i32
    %48 = arith.muli %c1_i32, %c8_i32_23 : i32
    %49 = tpu.assume_multiple %48, 8 : i32
    %50 = arith.index_cast %49 : i32 to index
    %c0_24 = arith.constant 0 : index
    %51 = vector.load %arg13[%50, %c0_24] : memref<32x128xf32, #tpu.memory_space<vmem>>, vector<8x128xf32>
    %cst_25 = arith.constant dense<0.000000e+00> : vector<8x128xf32>
    %52 = tpu.matmul %45, %4, %cst_25 {dimension_numbers = #tpu.dot_dimension_numbers<[1], [0], [0], [1], [0, 0, 1, 1], [], []>} : vector<8x32xf32>, vector<32x128xf32>, vector<8x128xf32> -> vector<8x128xf32>
    %53 = arith.addf %51, %52 : vector<8x128xf32>
    %54 = vector.extract_strided_slice %53 {offsets = [0, 0], sizes = [8, 32], strides = [1, 1]} : vector<8x128xf32> to vector<8x32xf32>
    %55 = arith.negf %54 : vector<8x32xf32>
    %56 = math.exp %55 : vector<8x32xf32>
    %cst_26 = arith.constant 1.000000e+00 : f32
    %57 = vector.broadcast %cst_26 : f32 to vector<8x32xf32>
    %58 = arith.addf %57, %56 : vector<8x32xf32>
    %59 = arith.divf %57, %58 : vector<8x32xf32>
    %60 = vector.extract_strided_slice %53 {offsets = [0, 32], sizes = [8, 32], strides = [1, 1]} : vector<8x128xf32> to vector<8x32xf32>
    %61 = arith.negf %60 : vector<8x32xf32>
    %62 = math.exp %61 : vector<8x32xf32>
    %cst_27 = arith.constant 1.000000e+00 : f32
    %63 = vector.broadcast %cst_27 : f32 to vector<8x32xf32>
    %64 = arith.addf %63, %62 : vector<8x32xf32>
    %65 = arith.divf %63, %64 : vector<8x32xf32>
    %66 = vector.extract_strided_slice %53 {offsets = [0, 64], sizes = [8, 32], strides = [1, 1]} : vector<8x128xf32> to vector<8x32xf32>
    %67 = math.tanh %66 : vector<8x32xf32>
    %68 = vector.extract_strided_slice %53 {offsets = [0, 96], sizes = [8, 32], strides = [1, 1]} : vector<8x128xf32> to vector<8x32xf32>
    %69 = arith.negf %68 : vector<8x32xf32>
    %70 = math.exp %69 : vector<8x32xf32>
    %cst_28 = arith.constant 1.000000e+00 : f32
    %71 = vector.broadcast %cst_28 : f32 to vector<8x32xf32>
    %72 = arith.addf %71, %70 : vector<8x32xf32>
    %73 = arith.divf %71, %72 : vector<8x32xf32>
    %74 = arith.mulf %65, %43 : vector<8x32xf32>
    %75 = arith.mulf %59, %67 : vector<8x32xf32>
    %76 = arith.addf %74, %75 : vector<8x32xf32>
    %77 = math.tanh %76 : vector<8x32xf32>
    %78 = arith.mulf %73, %77 : vector<8x32xf32>
    %79 = arith.index_cast %49 : i32 to index
    %c0_29 = arith.constant 0 : index
    %80 = vector.load %arg10[%79, %c0_29] : memref<32x32xf32, #tpu.memory_space<vmem>>, vector<8x32xf32>
    tpu.vector_store %arg10[%79, %c0_29], %78 {strides = array<i32>} : memref<32x32xf32, #tpu.memory_space<vmem>>, vector<8x32xf32>,
    %c2_i32 = arith.constant 2 : i32
    %c8_i32_30 = arith.constant 8 : i32
    %81 = arith.muli %c2_i32, %c8_i32_30 : i32
    %82 = tpu.assume_multiple %81, 8 : i32
    %83 = arith.index_cast %82 : i32 to index
    %c0_31 = arith.constant 0 : index
    %84 = vector.load %arg13[%83, %c0_31] : memref<32x128xf32, #tpu.memory_space<vmem>>, vector<8x128xf32>
    %cst_32 = arith.constant dense<0.000000e+00> : vector<8x128xf32>
    %85 = tpu.matmul %78, %4, %cst_32 {dimension_numbers = #tpu.dot_dimension_numbers<[1], [0], [0], [1], [0, 0, 1, 1], [], []>} : vector<8x32xf32>, vector<32x128xf32>, vector<8x128xf32> -> vector<8x128xf32>
    %86 = arith.addf %84, %85 : vector<8x128xf32>
    %87 = vector.extract_strided_slice %86 {offsets = [0, 0], sizes = [8, 32], strides = [1, 1]} : vector<8x128xf32> to vector<8x32xf32>
    %88 = arith.negf %87 : vector<8x32xf32>
    %89 = math.exp %88 : vector<8x32xf32>
    %cst_33 = arith.constant 1.000000e+00 : f32
    %90 = vector.broadcast %cst_33 : f32 to vector<8x32xf32>
    %91 = arith.addf %90, %89 : vector<8x32xf32>
    %92 = arith.divf %90, %91 : vector<8x32xf32>
    %93 = vector.extract_strided_slice %86 {offsets = [0, 32], sizes = [8, 32], strides = [1, 1]} : vector<8x128xf32> to vector<8x32xf32>
    %94 = arith.negf %93 : vector<8x32xf32>
    %95 = math.exp %94 : vector<8x32xf32>
    %cst_34 = arith.constant 1.000000e+00 : f32
    %96 = vector.broadcast %cst_34 : f32 to vector<8x32xf32>
    %97 = arith.addf %96, %95 : vector<8x32xf32>
    %98 = arith.divf %96, %97 : vector<8x32xf32>
    %99 = vector.extract_strided_slice %86 {offsets = [0, 64], sizes = [8, 32], strides = [1, 1]} : vector<8x128xf32> to vector<8x32xf32>
    %100 = math.tanh %99 : vector<8x32xf32>
    %101 = vector.extract_strided_slice %86 {offsets = [0, 96], sizes = [8, 32], strides = [1, 1]} : vector<8x128xf32> to vector<8x32xf32>
    %102 = arith.negf %101 : vector<8x32xf32>
    %103 = math.exp %102 : vector<8x32xf32>
    %cst_35 = arith.constant 1.000000e+00 : f32
    %104 = vector.broadcast %cst_35 : f32 to vector<8x32xf32>
    %105 = arith.addf %104, %103 : vector<8x32xf32>
    %106 = arith.divf %104, %105 : vector<8x32xf32>
    %107 = arith.mulf %98, %76 : vector<8x32xf32>
    %108 = arith.mulf %92, %100 : vector<8x32xf32>
    %109 = arith.addf %107, %108 : vector<8x32xf32>
    %110 = math.tanh %109 : vector<8x32xf32>
    %111 = arith.mulf %106, %110 : vector<8x32xf32>
    %112 = arith.index_cast %82 : i32 to index
    %c0_36 = arith.constant 0 : index
    %113 = vector.load %arg10[%112, %c0_36] : memref<32x32xf32, #tpu.memory_space<vmem>>, vector<8x32xf32>
    tpu.vector_store %arg10[%112, %c0_36], %111 {strides = array<i32>} : memref<32x32xf32, #tpu.memory_space<vmem>>, vector<8x32xf32>,
    %c3_i32 = arith.constant 3 : i32
    %c8_i32_37 = arith.constant 8 : i32
    %114 = arith.muli %c3_i32, %c8_i32_37 : i32
    %115 = tpu.assume_multiple %114, 8 : i32
    %116 = arith.index_cast %115 : i32 to index
    %c0_38 = arith.constant 0 : index
    %117 = vector.load %arg13[%116, %c0_38] : memref<32x128xf32, #tpu.memory_space<vmem>>, vector<8x128xf32>
    %cst_39 = arith.constant dense<0.000000e+00> : vector<8x128xf32>
    %118 = tpu.matmul %111, %4, %cst_39 {dimension_numbers = #tpu.dot_dimension_numbers<[1], [0], [0], [1], [0, 0, 1, 1], [], []>} : vector<8x32xf32>, vector<32x128xf32>, vector<8x128xf32> -> vector<8x128xf32>
    %119 = arith.addf %117, %118 : vector<8x128xf32>
    %120 = vector.extract_strided_slice %119 {offsets = [0, 0], sizes = [8, 32], strides = [1, 1]} : vector<8x128xf32> to vector<8x32xf32>
    %121 = arith.negf %120 : vector<8x32xf32>
    %122 = math.exp %121 : vector<8x32xf32>
    %cst_40 = arith.constant 1.000000e+00 : f32
    %123 = vector.broadcast %cst_40 : f32 to vector<8x32xf32>
    %124 = arith.addf %123, %122 : vector<8x32xf32>
    %125 = arith.divf %123, %124 : vector<8x32xf32>
    %126 = vector.extract_strided_slice %119 {offsets = [0, 32], sizes = [8, 32], strides = [1, 1]} : vector<8x128xf32> to vector<8x32xf32>
    %127 = arith.negf %126 : vector<8x32xf32>
    %128 = math.exp %127 : vector<8x32xf32>
    %cst_41 = arith.constant 1.000000e+00 : f32
    %129 = vector.broadcast %cst_41 : f32 to vector<8x32xf32>
    %130 = arith.addf %129, %128 : vector<8x32xf32>
    %131 = arith.divf %129, %130 : vector<8x32xf32>
    %132 = vector.extract_strided_slice %119 {offsets = [0, 64], sizes = [8, 32], strides = [1, 1]} : vector<8x128xf32> to vector<8x32xf32>
    %133 = math.tanh %132 : vector<8x32xf32>
    %134 = vector.extract_strided_slice %119 {offsets = [0, 96], sizes = [8, 32], strides = [1, 1]} : vector<8x128xf32> to vector<8x32xf32>
    %135 = arith.negf %134 : vector<8x32xf32>
    %136 = math.exp %135 : vector<8x32xf32>
    %cst_42 = arith.constant 1.000000e+00 : f32
    %137 = vector.broadcast %cst_42 : f32 to vector<8x32xf32>
    %138 = arith.addf %137, %136 : vector<8x32xf32>
    %139 = arith.divf %137, %138 : vector<8x32xf32>
    %140 = arith.mulf %131, %109 : vector<8x32xf32>
    %141 = arith.mulf %125, %133 : vector<8x32xf32>
    %142 = arith.addf %140, %141 : vector<8x32xf32>
    %143 = math.tanh %142 : vector<8x32xf32>
    %144 = arith.mulf %139, %143 : vector<8x32xf32>
    %145 = arith.index_cast %115 : i32 to index
    %c0_43 = arith.constant 0 : index
    %146 = vector.load %arg10[%145, %c0_43] : memref<32x32xf32, #tpu.memory_space<vmem>>, vector<8x32xf32>
    tpu.vector_store %arg10[%145, %c0_43], %144 {strides = array<i32>} : memref<32x32xf32, #tpu.memory_space<vmem>>, vector<8x32xf32>,
    %c4_i32 = arith.constant 4 : i32
    %c0_44 = arith.constant 0 : index
    %c0_45 = arith.constant 0 : index
    %c0_46 = arith.constant 0 : index
    %147 = vector.load %arg11[%c0_44, %c0_45, %c0_46] : memref<2x8x32xf32, #tpu.memory_space<vmem>>, vector<1x8x32xf32>
    %148 = vector.shape_cast %147 : vector<1x8x32xf32> to vector<8x32xf32>
    %149 = vector.shape_cast %144 : vector<8x32xf32> to vector<1x8x32xf32>
    tpu.vector_store %arg11[%c0_44, %c0_45, %c0_46], %149 {strides = array<i32>} : memref<2x8x32xf32, #tpu.memory_space<vmem>>, vector<1x8x32xf32>,
    %c0_47 = arith.constant 0 : index
    %c0_48 = arith.constant 0 : index
    %c0_49 = arith.constant 0 : index
    %150 = vector.load %arg12[%c0_47, %c0_48, %c0_49] : memref<2x8x32xf32, #tpu.memory_space<vmem>>, vector<1x8x32xf32>
    %151 = vector.shape_cast %150 : vector<1x8x32xf32> to vector<8x32xf32>
    %152 = vector.shape_cast %142 : vector<8x32xf32> to vector<1x8x32xf32>
    tpu.vector_store %arg12[%c0_47, %c0_48, %c0_49], %152 {strides = array<i32>} : memref<2x8x32xf32, #tpu.memory_space<vmem>>, vector<1x8x32xf32>,
    %c0_50 = arith.constant 0 : index
    %c0_51 = arith.constant 0 : index
    %153 = vector.load %arg7[%c0_50, %c0_51] : memref<32x128xf32, #tpu.memory_space<vmem>>, vector<32x128xf32>
    %c0_52 = arith.constant 0 : index
    %c0_53 = arith.constant 0 : index
    %154 = vector.load %arg8[%c0_52, %c0_53] : memref<32x128xf32, #tpu.memory_space<vmem>>, vector<32x128xf32>
    %c0_54 = arith.constant 0 : index
    %c0_55 = arith.constant 0 : index
    %155 = vector.load %arg9[%c0_54, %c0_55] : memref<1x128xf32, #tpu.memory_space<vmem>>, vector<1x128xf32>
    %c0_56 = arith.constant 0 : index
    %c0_57 = arith.constant 0 : index
    %156 = vector.load %arg10[%c0_56, %c0_57] : memref<32x32xf32, #tpu.memory_space<vmem>>, vector<32x32xf32>
    %cst_58 = arith.constant dense<0.000000e+00> : vector<32x128xf32>
    %157 = tpu.matmul %156, %153, %cst_58 {dimension_numbers = #tpu.dot_dimension_numbers<[1], [0], [0], [1], [0, 0, 1, 1], [], []>} : vector<32x32xf32>, vector<32x128xf32>, vector<32x128xf32> -> vector<32x128xf32>
    %158 = vector.broadcast %155 : vector<1x128xf32> to vector<32x128xf32>
    %159 = arith.addf %157, %158 : vector<32x128xf32>
    %c0_59 = arith.constant 0 : index
    %c0_60 = arith.constant 0 : index
    %160 = vector.load %arg13[%c0_59, %c0_60] : memref<32x128xf32, #tpu.memory_space<vmem>>, vector<32x128xf32>
    tpu.vector_store %arg13[%c0_59, %c0_60], %159 {strides = array<i32>} : memref<32x128xf32, #tpu.memory_space<vmem>>, vector<32x128xf32>,
    %c1 = arith.constant 1 : index
    %c0_61 = arith.constant 0 : index
    %c0_62 = arith.constant 0 : index
    %161 = vector.load %arg11[%c1, %c0_61, %c0_62] : memref<2x8x32xf32, #tpu.memory_space<vmem>>, vector<1x8x32xf32>
    %162 = vector.shape_cast %161 : vector<1x8x32xf32> to vector<8x32xf32>
    %c1_63 = arith.constant 1 : index
    %c0_64 = arith.constant 0 : index
    %c0_65 = arith.constant 0 : index
    %163 = vector.load %arg12[%c1_63, %c0_64, %c0_65] : memref<2x8x32xf32, #tpu.memory_space<vmem>>, vector<1x8x32xf32>
    %164 = vector.shape_cast %163 : vector<1x8x32xf32> to vector<8x32xf32>
    %c0_i32_66 = arith.constant 0 : i32
    %c8_i32_67 = arith.constant 8 : i32
    %165 = arith.muli %c0_i32_66, %c8_i32_67 : i32
    %166 = tpu.assume_multiple %165, 8 : i32
    %167 = arith.index_cast %166 : i32 to index
    %c0_68 = arith.constant 0 : index
    %168 = vector.load %arg13[%167, %c0_68] : memref<32x128xf32, #tpu.memory_space<vmem>>, vector<8x128xf32>
    %cst_69 = arith.constant dense<0.000000e+00> : vector<8x128xf32>
    %169 = tpu.matmul %162, %154, %cst_69 {dimension_numbers = #tpu.dot_dimension_numbers<[1], [0], [0], [1], [0, 0, 1, 1], [], []>} : vector<8x32xf32>, vector<32x128xf32>, vector<8x128xf32> -> vector<8x128xf32>
    %170 = arith.addf %168, %169 : vector<8x128xf32>
    %171 = vector.extract_strided_slice %170 {offsets = [0, 0], sizes = [8, 32], strides = [1, 1]} : vector<8x128xf32> to vector<8x32xf32>
    %172 = arith.negf %171 : vector<8x32xf32>
    %173 = math.exp %172 : vector<8x32xf32>
    %cst_70 = arith.constant 1.000000e+00 : f32
    %174 = vector.broadcast %cst_70 : f32 to vector<8x32xf32>
    %175 = arith.addf %174, %173 : vector<8x32xf32>
    %176 = arith.divf %174, %175 : vector<8x32xf32>
    %177 = vector.extract_strided_slice %170 {offsets = [0, 32], sizes = [8, 32], strides = [1, 1]} : vector<8x128xf32> to vector<8x32xf32>
    %178 = arith.negf %177 : vector<8x32xf32>
    %179 = math.exp %178 : vector<8x32xf32>
    %cst_71 = arith.constant 1.000000e+00 : f32
    %180 = vector.broadcast %cst_71 : f32 to vector<8x32xf32>
    %181 = arith.addf %180, %179 : vector<8x32xf32>
    %182 = arith.divf %180, %181 : vector<8x32xf32>
    %183 = vector.extract_strided_slice %170 {offsets = [0, 64], sizes = [8, 32], strides = [1, 1]} : vector<8x128xf32> to vector<8x32xf32>
    %184 = math.tanh %183 : vector<8x32xf32>
    %185 = vector.extract_strided_slice %170 {offsets = [0, 96], sizes = [8, 32], strides = [1, 1]} : vector<8x128xf32> to vector<8x32xf32>
    %186 = arith.negf %185 : vector<8x32xf32>
    %187 = math.exp %186 : vector<8x32xf32>
    %cst_72 = arith.constant 1.000000e+00 : f32
    %188 = vector.broadcast %cst_72 : f32 to vector<8x32xf32>
    %189 = arith.addf %188, %187 : vector<8x32xf32>
    %190 = arith.divf %188, %189 : vector<8x32xf32>
    %191 = arith.mulf %182, %164 : vector<8x32xf32>
    %192 = arith.mulf %176, %184 : vector<8x32xf32>
    %193 = arith.addf %191, %192 : vector<8x32xf32>
    %194 = math.tanh %193 : vector<8x32xf32>
    %195 = arith.mulf %190, %194 : vector<8x32xf32>
    %196 = arith.index_cast %166 : i32 to index
    %c0_73 = arith.constant 0 : index
    %197 = vector.load %arg10[%196, %c0_73] : memref<32x32xf32, #tpu.memory_space<vmem>>, vector<8x32xf32>
    tpu.vector_store %arg10[%196, %c0_73], %195 {strides = array<i32>} : memref<32x32xf32, #tpu.memory_space<vmem>>, vector<8x32xf32>,
    %c1_i32_74 = arith.constant 1 : i32
    %c8_i32_75 = arith.constant 8 : i32
    %198 = arith.muli %c1_i32_74, %c8_i32_75 : i32
    %199 = tpu.assume_multiple %198, 8 : i32
    %200 = arith.index_cast %199 : i32 to index
    %c0_76 = arith.constant 0 : index
    %201 = vector.load %arg13[%200, %c0_76] : memref<32x128xf32, #tpu.memory_space<vmem>>, vector<8x128xf32>
    %cst_77 = arith.constant dense<0.000000e+00> : vector<8x128xf32>
    %202 = tpu.matmul %195, %154, %cst_77 {dimension_numbers = #tpu.dot_dimension_numbers<[1], [0], [0], [1], [0, 0, 1, 1], [], []>} : vector<8x32xf32>, vector<32x128xf32>, vector<8x128xf32> -> vector<8x128xf32>
    %203 = arith.addf %201, %202 : vector<8x128xf32>
    %204 = vector.extract_strided_slice %203 {offsets = [0, 0], sizes = [8, 32], strides = [1, 1]} : vector<8x128xf32> to vector<8x32xf32>
    %205 = arith.negf %204 : vector<8x32xf32>
    %206 = math.exp %205 : vector<8x32xf32>
    %cst_78 = arith.constant 1.000000e+00 : f32
    %207 = vector.broadcast %cst_78 : f32 to vector<8x32xf32>
    %208 = arith.addf %207, %206 : vector<8x32xf32>
    %209 = arith.divf %207, %208 : vector<8x32xf32>
    %210 = vector.extract_strided_slice %203 {offsets = [0, 32], sizes = [8, 32], strides = [1, 1]} : vector<8x128xf32> to vector<8x32xf32>
    %211 = arith.negf %210 : vector<8x32xf32>
    %212 = math.exp %211 : vector<8x32xf32>
    %cst_79 = arith.constant 1.000000e+00 : f32
    %213 = vector.broadcast %cst_79 : f32 to vector<8x32xf32>
    %214 = arith.addf %213, %212 : vector<8x32xf32>
    %215 = arith.divf %213, %214 : vector<8x32xf32>
    %216 = vector.extract_strided_slice %203 {offsets = [0, 64], sizes = [8, 32], strides = [1, 1]} : vector<8x128xf32> to vector<8x32xf32>
    %217 = math.tanh %216 : vector<8x32xf32>
    %218 = vector.extract_strided_slice %203 {offsets = [0, 96], sizes = [8, 32], strides = [1, 1]} : vector<8x128xf32> to vector<8x32xf32>
    %219 = arith.negf %218 : vector<8x32xf32>
    %220 = math.exp %219 : vector<8x32xf32>
    %cst_80 = arith.constant 1.000000e+00 : f32
    %221 = vector.broadcast %cst_80 : f32 to vector<8x32xf32>
    %222 = arith.addf %221, %220 : vector<8x32xf32>
    %223 = arith.divf %221, %222 : vector<8x32xf32>
    %224 = arith.mulf %215, %193 : vector<8x32xf32>
    %225 = arith.mulf %209, %217 : vector<8x32xf32>
    %226 = arith.addf %224, %225 : vector<8x32xf32>
    %227 = math.tanh %226 : vector<8x32xf32>
    %228 = arith.mulf %223, %227 : vector<8x32xf32>
    %229 = arith.index_cast %199 : i32 to index
    %c0_81 = arith.constant 0 : index
    %230 = vector.load %arg10[%229, %c0_81] : memref<32x32xf32, #tpu.memory_space<vmem>>, vector<8x32xf32>
    tpu.vector_store %arg10[%229, %c0_81], %228 {strides = array<i32>} : memref<32x32xf32, #tpu.memory_space<vmem>>, vector<8x32xf32>,
    %c2_i32_82 = arith.constant 2 : i32
    %c8_i32_83 = arith.constant 8 : i32
    %231 = arith.muli %c2_i32_82, %c8_i32_83 : i32
    %232 = tpu.assume_multiple %231, 8 : i32
    %233 = arith.index_cast %232 : i32 to index
    %c0_84 = arith.constant 0 : index
    %234 = vector.load %arg13[%233, %c0_84] : memref<32x128xf32, #tpu.memory_space<vmem>>, vector<8x128xf32>
    %cst_85 = arith.constant dense<0.000000e+00> : vector<8x128xf32>
    %235 = tpu.matmul %228, %154, %cst_85 {dimension_numbers = #tpu.dot_dimension_numbers<[1], [0], [0], [1], [0, 0, 1, 1], [], []>} : vector<8x32xf32>, vector<32x128xf32>, vector<8x128xf32> -> vector<8x128xf32>
    %236 = arith.addf %234, %235 : vector<8x128xf32>
    %237 = vector.extract_strided_slice %236 {offsets = [0, 0], sizes = [8, 32], strides = [1, 1]} : vector<8x128xf32> to vector<8x32xf32>
    %238 = arith.negf %237 : vector<8x32xf32>
    %239 = math.exp %238 : vector<8x32xf32>
    %cst_86 = arith.constant 1.000000e+00 : f32
    %240 = vector.broadcast %cst_86 : f32 to vector<8x32xf32>
    %241 = arith.addf %240, %239 : vector<8x32xf32>
    %242 = arith.divf %240, %241 : vector<8x32xf32>
    %243 = vector.extract_strided_slice %236 {offsets = [0, 32], sizes = [8, 32], strides = [1, 1]} : vector<8x128xf32> to vector<8x32xf32>
    %244 = arith.negf %243 : vector<8x32xf32>
    %245 = math.exp %244 : vector<8x32xf32>
    %cst_87 = arith.constant 1.000000e+00 : f32
    %246 = vector.broadcast %cst_87 : f32 to vector<8x32xf32>
    %247 = arith.addf %246, %245 : vector<8x32xf32>
    %248 = arith.divf %246, %247 : vector<8x32xf32>
    %249 = vector.extract_strided_slice %236 {offsets = [0, 64], sizes = [8, 32], strides = [1, 1]} : vector<8x128xf32> to vector<8x32xf32>
    %250 = math.tanh %249 : vector<8x32xf32>
    %251 = vector.extract_strided_slice %236 {offsets = [0, 96], sizes = [8, 32], strides = [1, 1]} : vector<8x128xf32> to vector<8x32xf32>
    %252 = arith.negf %251 : vector<8x32xf32>
    %253 = math.exp %252 : vector<8x32xf32>
    %cst_88 = arith.constant 1.000000e+00 : f32
    %254 = vector.broadcast %cst_88 : f32 to vector<8x32xf32>
    %255 = arith.addf %254, %253 : vector<8x32xf32>
    %256 = arith.divf %254, %255 : vector<8x32xf32>
    %257 = arith.mulf %248, %226 : vector<8x32xf32>
    %258 = arith.mulf %242, %250 : vector<8x32xf32>
    %259 = arith.addf %257, %258 : vector<8x32xf32>
    %260 = math.tanh %259 : vector<8x32xf32>
    %261 = arith.mulf %256, %260 : vector<8x32xf32>
    %262 = arith.index_cast %232 : i32 to index
    %c0_89 = arith.constant 0 : index
    %263 = vector.load %arg10[%262, %c0_89] : memref<32x32xf32, #tpu.memory_space<vmem>>, vector<8x32xf32>
    tpu.vector_store %arg10[%262, %c0_89], %261 {strides = array<i32>} : memref<32x32xf32, #tpu.memory_space<vmem>>, vector<8x32xf32>,
    %c3_i32_90 = arith.constant 3 : i32
    %c8_i32_91 = arith.constant 8 : i32
    %264 = arith.muli %c3_i32_90, %c8_i32_91 : i32
    %265 = tpu.assume_multiple %264, 8 : i32
    %266 = arith.index_cast %265 : i32 to index
    %c0_92 = arith.constant 0 : index
    %267 = vector.load %arg13[%266, %c0_92] : memref<32x128xf32, #tpu.memory_space<vmem>>, vector<8x128xf32>
    %cst_93 = arith.constant dense<0.000000e+00> : vector<8x128xf32>
    %268 = tpu.matmul %261, %154, %cst_93 {dimension_numbers = #tpu.dot_dimension_numbers<[1], [0], [0], [1], [0, 0, 1, 1], [], []>} : vector<8x32xf32>, vector<32x128xf32>, vector<8x128xf32> -> vector<8x128xf32>
    %269 = arith.addf %267, %268 : vector<8x128xf32>
    %270 = vector.extract_strided_slice %269 {offsets = [0, 0], sizes = [8, 32], strides = [1, 1]} : vector<8x128xf32> to vector<8x32xf32>
    %271 = arith.negf %270 : vector<8x32xf32>
    %272 = math.exp %271 : vector<8x32xf32>
    %cst_94 = arith.constant 1.000000e+00 : f32
    %273 = vector.broadcast %cst_94 : f32 to vector<8x32xf32>
    %274 = arith.addf %273, %272 : vector<8x32xf32>
    %275 = arith.divf %273, %274 : vector<8x32xf32>
    %276 = vector.extract_strided_slice %269 {offsets = [0, 32], sizes = [8, 32], strides = [1, 1]} : vector<8x128xf32> to vector<8x32xf32>
    %277 = arith.negf %276 : vector<8x32xf32>
    %278 = math.exp %277 : vector<8x32xf32>
    %cst_95 = arith.constant 1.000000e+00 : f32
    %279 = vector.broadcast %cst_95 : f32 to vector<8x32xf32>
    %280 = arith.addf %279, %278 : vector<8x32xf32>
    %281 = arith.divf %279, %280 : vector<8x32xf32>
    %282 = vector.extract_strided_slice %269 {offsets = [0, 64], sizes = [8, 32], strides = [1, 1]} : vector<8x128xf32> to vector<8x32xf32>
    %283 = math.tanh %282 : vector<8x32xf32>
    %284 = vector.extract_strided_slice %269 {offsets = [0, 96], sizes = [8, 32], strides = [1, 1]} : vector<8x128xf32> to vector<8x32xf32>
    %285 = arith.negf %284 : vector<8x32xf32>
    %286 = math.exp %285 : vector<8x32xf32>
    %cst_96 = arith.constant 1.000000e+00 : f32
    %287 = vector.broadcast %cst_96 : f32 to vector<8x32xf32>
    %288 = arith.addf %287, %286 : vector<8x32xf32>
    %289 = arith.divf %287, %288 : vector<8x32xf32>
    %290 = arith.mulf %281, %259 : vector<8x32xf32>
    %291 = arith.mulf %275, %283 : vector<8x32xf32>
    %292 = arith.addf %290, %291 : vector<8x32xf32>
    %293 = math.tanh %292 : vector<8x32xf32>
    %294 = arith.mulf %289, %293 : vector<8x32xf32>
    %295 = arith.index_cast %265 : i32 to index
    %c0_97 = arith.constant 0 : index
    %296 = vector.load %arg10[%295, %c0_97] : memref<32x32xf32, #tpu.memory_space<vmem>>, vector<8x32xf32>
    tpu.vector_store %arg10[%295, %c0_97], %294 {strides = array<i32>} : memref<32x32xf32, #tpu.memory_space<vmem>>, vector<8x32xf32>,
    %c4_i32_98 = arith.constant 4 : i32
    %c1_99 = arith.constant 1 : index
    %c0_100 = arith.constant 0 : index
    %c0_101 = arith.constant 0 : index
    %297 = vector.load %arg11[%c1_99, %c0_100, %c0_101] : memref<2x8x32xf32, #tpu.memory_space<vmem>>, vector<1x8x32xf32>
    %298 = vector.shape_cast %297 : vector<1x8x32xf32> to vector<8x32xf32>
    %299 = vector.shape_cast %294 : vector<8x32xf32> to vector<1x8x32xf32>
    tpu.vector_store %arg11[%c1_99, %c0_100, %c0_101], %299 {strides = array<i32>} : memref<2x8x32xf32, #tpu.memory_space<vmem>>, vector<1x8x32xf32>,
    %c1_102 = arith.constant 1 : index
    %c0_103 = arith.constant 0 : index
    %c0_104 = arith.constant 0 : index
    %300 = vector.load %arg12[%c1_102, %c0_103, %c0_104] : memref<2x8x32xf32, #tpu.memory_space<vmem>>, vector<1x8x32xf32>
    %301 = vector.shape_cast %300 : vector<1x8x32xf32> to vector<8x32xf32>
    %302 = vector.shape_cast %292 : vector<8x32xf32> to vector<1x8x32xf32>
    tpu.vector_store %arg12[%c1_102, %c0_103, %c0_104], %302 {strides = array<i32>} : memref<2x8x32xf32, #tpu.memory_space<vmem>>, vector<1x8x32xf32>,
    return
  }
  func.func @transform_0(%arg0: i32) -> (i32, i32) {
    %c0_i32 = arith.constant 0 : i32
    %c0_i32_0 = arith.constant 0 : i32
    return %arg0, %c0_i32 : i32, i32
  }
  func.func @transform_1(%arg0: i32) -> (i32, i32, i32) {
    %c0_i32 = arith.constant 0 : i32
    %c0_i32_0 = arith.constant 0 : i32
    %c0_i32_1 = arith.constant 0 : i32
    %c0_i32_2 = arith.constant 0 : i32
    return %c0_i32, %c0_i32_0, %c0_i32_1 : i32, i32, i32
  }
  func.func @transform_2(%arg0: i32) -> (i32, i32, i32) {
    %c0_i32 = arith.constant 0 : i32
    %c0_i32_0 = arith.constant 0 : i32
    %c0_i32_1 = arith.constant 0 : i32
    %c0_i32_2 = arith.constant 0 : i32
    return %c0_i32, %c0_i32_0, %c0_i32_1 : i32, i32, i32
  }
  func.func @transform_3(%arg0: i32) -> (i32, i32) {
    %c0_i32 = arith.constant 0 : i32
    %c0_i32_0 = arith.constant 0 : i32
    %c0_i32_1 = arith.constant 0 : i32
    return %c0_i32, %c0_i32_0 : i32, i32
  }
  func.func @transform_4(%arg0: i32) -> (i32, i32) {
    %c0_i32 = arith.constant 0 : i32
    %c0_i32_0 = arith.constant 0 : i32
    %c0_i32_1 = arith.constant 0 : i32
    return %c0_i32, %c0_i32_0 : i32, i32
  }
  func.func @transform_5(%arg0: i32) -> (i32, i32) {
    %c0_i32 = arith.constant 0 : i32
    %c0_i32_0 = arith.constant 0 : i32
    %c0_i32_1 = arith.constant 0 : i32
    return %c0_i32, %c0_i32_0 : i32, i32
  }
  func.func @transform_6(%arg0: i32) -> (i32, i32) {
    %c0_i32 = arith.constant 0 : i32
    %c0_i32_0 = arith.constant 0 : i32
    %c0_i32_1 = arith.constant 0 : i32
    return %c0_i32, %c0_i32_0 : i32, i32
  }
  func.func @transform_7(%arg0: i32) -> (i32, i32) {
    %c0_i32 = arith.constant 0 : i32
    %c0_i32_0 = arith.constant 0 : i32
    %c0_i32_1 = arith.constant 0 : i32
    return %c0_i32, %c0_i32_0 : i32, i32
  }
  func.func @transform_8(%arg0: i32) -> (i32, i32) {
    %c0_i32 = arith.constant 0 : i32
    %c0_i32_0 = arith.constant 0 : i32
    %c0_i32_1 = arith.constant 0 : i32
    return %c0_i32, %c0_i32_0 : i32, i32
  }
  func.func @transform_9(%arg0: i32) -> (i32, i32) {
    %c0_i32 = arith.constant 0 : i32
    %c0_i32_0 = arith.constant 0 : i32
    return %arg0, %c0_i32 : i32, i32
  }
  func.func @transform_10(%arg0: i32) -> (i32, i32, i32) {
    %c0_i32 = arith.constant 0 : i32
    %c0_i32_0 = arith.constant 0 : i32
    %c0_i32_1 = arith.constant 0 : i32
    %c0_i32_2 = arith.constant 0 : i32
    return %c0_i32, %c0_i32_0, %c0_i32_1 : i32, i32, i32
  }
  func.func @transform_11(%arg0: i32) -> (i32, i32, i32) {
    %c0_i32 = arith.constant 0 : i32
    %c0_i32_0 = arith.constant 0 : i32
    %c0_i32_1 = arith.constant 0 : i32
    %c0_i32_2 = arith.constant 0 : i32
    return %c0_i32, %c0_i32_0, %c0_i32_1 : i32, i32, i32
  }
}

</mosaic_0001>

<bundles_post_ra>
// kernel: tpu_custom_call.1
= control target key start
LH: loop header
LB: loop body
LE: loop exit
PB: predicated region body
PF: predicated region fallthrough
CT: control target
= control target key end

     0   :  { %17 = vsyncpa [#allocation4], 0  ;;  %s1901_s0 = inlined_call_operand.vmem [shape: f32[64,16], index: 0, kind: input, shape index: {}]   ;;  %s1902_s1 = inlined_call_operand.vmem [shape: f32[2,8,32], index: 1, kind: input, shape index: {}]   ;;  %s1903_s2 = inlined_call_operand.hbm [shape: f32[2,8,32], index: 2, kind: input, shape index: {}]   ;;  %s1904_s3 = inlined_call_operand.hbm [shape: f32[16,128], index: 3, kind: input, shape index: {}]   ;;  %s1905_s4 = inlined_call_operand.vmem [shape: f32[32,128], index: 4, kind: input, shape index: {}]   ;;  %s1906_s5 = inlined_call_operand.vmem [shape: f32[1,128], index: 5, kind: input, shape index: {}]   ;;  %s1907_s6 = inlined_call_operand.vmem [shape: f32[32,128], index: 6, kind: input, shape index: {}]   ;;  %s1908_s7 = inlined_call_operand.hbm [shape: f32[32,128], index: 7, kind: input, shape index: {}]   ;;  %s1909_s8 = inlined_call_operand.vmem [shape: f32[1,128], index: 8, kind: input, shape index: {}]   ;;  %s1910_s9 = inlined_call_operand.vmem [shape: f32[64,32], index: 9, kind: output, shape index: {0}]   ;;  %s1911_s10 = inlined_call_operand.hbm [shape: f32[2,8,32], index: 10, kind: output, shape index: {1}]   ;;  %s1912_s11 = inlined_call_operand.hbm [shape: f32[2,8,32], index: 11, kind: output, shape index: {2}]  }
   0x1   :  { %18 = vsyncpa [#allocation7], 0 }
   0x2   :  { %19 = vsyncpa [#allocation5], 0 }
   0x3   :  { %20 = vsyncpa [#allocation11], 0  ;;  %s1695_s17 = smov 0  }
   0x4 LB: > { %s1701_s18 = sadd.s32 4294967295, %s1621_s17   ;;  %p1277_p0 = scmp.ge.s32.totalorder %s1621_s17, 1  ;;  %s1621_s17 = sphi %s1695_s17, %s26_s17  }
   0x5   : > { %p293_p1 = scmp.lt.s32.totalorder %s1621_s17, 3  ;;  %p1278_p2 = scmp.ne.s32.totalorder %s1701_s18, 0 }
   0x6   : > { %p1357_p3 = scmp.eq.s32.totalorder %s1701_s18, 0  ;;  %s321_s21 = sshll.u32 %s1904_s3, 4  ;;  %s322_s21 = int_to_ptr.hbm [resolvable:$true] %s321_s21 }
   0x7   : > { %p1710_p4 = pnand %p1277_p0, %p293_p1  ;;  %s307_s25 = sshll.u32 %s1903_s2, 4  ;;  %s308_s25 = int_to_ptr.hbm [resolvable:$true] %s307_s25 }
   0x8   : > { %s1623_s26 = smov [#allocation6]   ;;  %s1624_s28 = smov [#allocation3]  }
   0x9   : > { %p1347_p5 = pneg %p1710_p4  ;;  %s323_s27 = sshll.u32 %s1623_s26, 4  ;;  %s324_s27 = int_to_ptr.vmem [resolvable:$true] %s323_s27 }
   0xa   : > { %s309_s29 = sshll.u32 %s1624_s28, 4  ;;  %s344_s13 = sshll.u32 %s1908_s7, 4  ;;  %s310_s29 = int_to_ptr.vmem [resolvable:$true] %s309_s29  ;;  %s345_s13 = int_to_ptr.hbm [resolvable:$true] %s344_s13 }
   0xb   : > { %p1348_p6 = pnand %p1357_p3, %p1347_p5  ;;  %s1625_s14 = smov 128  }
   0xc   : > { %s1626_s15 = smov 8   ;;  %s1627_s16 = smov [#allocation8]  }
   0xd   : > { %1353 = dma.hbm_to_vmem [thread:$0]  (!%p1348_p6), %s322_s21, 256, %s324_s27, [#allocation7], %s1625_s14, %s1625_s14, %s1626_s15  }
   0xe   : > { %1350 = dma.hbm_to_vmem [thread:$0]  (!%p1348_p6), %s308_s25, 256, %s310_s29, [#allocation4], %s1625_s14, %s1625_s14, %s1626_s15  }
   0xf   : > { %s346_s19 = sshll.u32 %s1627_s16, 4  ;;  %374 = sbr.rel (%p1710_p4) target bundleno = 4332 (0x10ec), region = 56  ;;  %s347_s19 = int_to_ptr.vmem [resolvable:$true] %s346_s19 }
  0x10   : > { %1356 = dma.hbm_to_vmem [thread:$0]  (!%p1348_p6), %s345_s13, 512, %s347_s19, [#allocation7], %s1625_s14, %s1625_s14, %s1626_s15  }
  0x14   : > { %1604 = dma.done.wait (%p1357_p3), [#allocation4], 256  }
  0x15   : > { %1606 = vsyncadd (%p1357_p3), [#allocation4], 4294967040 }
  0x16   : > { %1608 = dma.done.wait (%p1357_p3), [#allocation7], 768  }
  0x17   : > { %1610 = vsyncadd (%p1357_p3), [#allocation7], 4294966528  ;;  %s1286_s20 = sshll.u32 %s1701_s18, 2 }
  0x18   : > { %p426_p7 = scmp.lt.s32.totalorder %s1286_s20, 7  ;;  %440 = sbr.rel (%p1278_p2) target bundleno = 34 (0x22), region = 72 }
  0x1a   : > { %s1915_s20 = smov (!%p426_p7, %s1286_s20), 7 }
  0x1b   : > { %s1287_s21 = sshll.u32 %s1915_s20, 3 }
  0x1c   : > { %s1738_s24 = scalar_lea.vmem %s1901_s0, %s1287_s21  ;;  %s1743_s27 = scalar_lea.vmem %s1910_s9, %s1287_s21 }
  0x1d   : > { %v441_v0 = vld [vmem:[%s1902_s1] sm:$0xff]  ;;  %vm443_vm0 = vcmask 261120   ;;  %v442_v1 = vld [vmem:[%s1902_s1 + $0x8] sm:$0xff] }
  0x1e   : > { %v446_v2 = vld [vmem:[#allocation3] sm:$0xff]  ;;  %444 = vst.msk [vmem:[#allocation9] sm:$0xff] %vm443_vm0, %v441_v0  ;;  %v447_v3 = vld [vmem:[#allocation3 + $0x8] sm:$0xff] }
  0x1f   : > { %445 = vst.msk [vmem:[#allocation9 + $0x8] sm:$0xff] %vm443_vm0, %v442_v1 }
  0x20   : > { %448 = vst.msk [vmem:[#allocation10] sm:$0xff] %vm443_vm0, %v446_v2 }
  0x21   : > { %449 = vst.msk [vmem:[#allocation10 + $0x8] sm:$0xff] %vm443_vm0, %v447_v3 }
  0x22 PF: > { %v455_v4 = vld [vmem:[%s1905_s4 + $0x18] sm:$0xff]  ;;  %v454_v6 = vld [vmem:[%s1905_s4 + $0x10] sm:$0xff]  ;;  %v457_v8 = vld [vmem:[%s1738_s24] sm:$0xff]  ;;  %vm464_vm1 = vcmask 130048   ;;  %vm513_vm2 = vcmask 261120   ;;  %s1628_s26 = smov 64  }
  0x23   : > { %v451_v5 = vld [vmem:[#allocation6 + $0x8] sm:$0xff]  ;;  %529 = vmatpush.msra.mxu1 %v455_v4  ;;  %v450_v7 = vld [vmem:[#allocation6] sm:$0xff]  ;;  %v453_v9 = vld [vmem:[%s1905_s4 + $0x8] sm:$0xff]  ;;  %600 = vmatpush.msra.mxu3 %v455_v4  ;;  %s1629_s28 = smov 32   ;;  %s1630_s21 = smov 96  }
  0x24   : > { %491 = vmatpush.msra.mxu0 %v451_v5  ;;  %v452_v10 = vld [vmem:[%s1905_s4] sm:$0xff]  ;;  %v458_v41 = vld [vmem:[%s1738_s24 + $0x8] sm:$0xff]  ;;  %v459_v5 = vld [vmem:[%s1738_s24 + $0x10] sm:$0xff]  ;;  %s1631_s23 = smov [#allocation10]   ;;  %s1164_s29 = sshll.u32 %s1912_s11, 4  ;;  %s1165_s29 = int_to_ptr.hbm [resolvable:$true] %s1164_s29 }
  0x25   : > { %530 = vmatpush.msra.mxu1 %v454_v6  ;;  %601 = vmatpush.msra.mxu3 %v454_v6  ;;  %v510_v11 = vld [vmem:[#allocation9] sm:$0xff]  ;;  %s1162_s22 = sshll.u32 %s1631_s23, 4  ;;  %p1363_p8 = scmp.eq.s32.totalorder %s1701_s18, 1  ;;  %s1163_s22 = int_to_ptr.vmem [resolvable:$true] %s1162_s22 }
  0x26   : > { %492 = vmatpush.msra.mxu0 %v450_v7  ;;  %v1771_v12 = vld [vmem:[%s1906_s5] ss:$0 sm:$0xff]  ;;  %s1633_s30 = smov 8   ;;  %s1150_s15 = sshll.u32 %s1911_s10, 4  ;;  %s1151_s15 = int_to_ptr.hbm [resolvable:$true] %s1150_s15 }
  0x27   : > { %1291 = vmatmul.msk.f32.vlgmr.msra.gmra.mxu0 %vm464_vm1, %v457_v8  ;;  %531 = vmatpush.msra.mxu1 %v453_v9  ;;  %v511_v18 = vld [vmem:[#allocation10] sm:$0xff] }
  0x28   : > { %602 = vmatpush.msra.mxu3 %v453_v9 }
  0x29   : > { %532 = vmatpush.msra.mxu1 %v452_v10 }
  0x2a   : > { %1295 = vmatmul.msk.f32.vlgmr.msra.gmra.mxu1 %vm513_vm2, %v510_v11  ;;  %603 = vmatpush.msra.mxu3 %v452_v10 }
  0x2b   : > { %736 = vmatpush.msrb.mxu1 %v455_v4 }
  0x2c   : > { %668 = vmatpush.msrb.mxu3 %v455_v4 }
  0x2d   : > { %737 = vmatpush.msrb.mxu1 %v454_v6 }
  0x2e   : > { %669 = vmatpush.msrb.mxu3 %v454_v6 }
  0x2f   : > { %738 = vmatpush.msrb.mxu1 %v453_v9  ;;  %1292 = vmatmul.msk.f32.gmra.mxu0 %vm464_vm1, %v458_v41 }
  0x30   : > { %670 = vmatpush.msrb.mxu3 %v453_v9 }
  0x31   : > { %739 = vmatpush.msrb.mxu1 %v452_v10 }
  0x32   : > { %671 = vmatpush.msrb.mxu3 %v452_v10 }
  0x37   : > { %1293 = vmatmul.msk.f32.gmra.mxu0 %vm464_vm1, %v459_v5  ;;  %v856_v5 = vld [vmem:[#allocation9 + $0x8] sm:$0xff] }
  0xa4   : > { %v494_v13 = vpop.f32.mrf.mxu0 }
  0xa5   : > { %v495_v14 = vadd.f32 %v1771_v12, %v494_v13 }
  0xa7   : > { %v534_v15 = vpop.f32.mrf.mxu1 }
  0xa8   : > { %v537_v16 = vadd.f32 %v534_v15, %v495_v14 }
  0xaa   : > { %1389 = vtanh.f32 %v537_v16  ;;  %v1296_v19 = vmul.f32 -1.442695, %v537_v16 }
  0xac   : > { %1391 = vpow2.f32 %v1296_v19  ;;  %v497_v43 = vpop.f32.mrf.mxu0 }
  0xad   : > { %v498_v44 = vadd.f32 %v1771_v12, %v497_v43 }
  0xb0   : > { %v1390_v17 = vpop.eup %1389 }
  0xb1   : > { %564 = vrot.lane.b32.xlu0 %v1390_v17, %s1628_s26 }
  0xb2   : > { %v1392_v20 = vpop.eup %1391 }
  0xb3   : > { %v541_v21 = vadd.f32 1.0, %v1392_v20 }
  0xb4   : > { %v500_v7 = vpop.f32.mrf.mxu0 }
  0xb5   : > { %1393 = vrcp.f32 %v541_v21  ;;  %v553_v27 = vand.u32 2147483648, %v541_v21  ;;  %vm547_vm4 = vweird.f32 %v541_v21  ;;  %v551_v28 = vand.u32 2147483647, %v541_v21 }
  0xb6   : > { %v501_v8 = vadd.f32 %v1771_v12, %v500_v7  ;;  %v858_v7 = vld [vmem:[#allocation10 + $0x8] sm:$0xff] }
  0xb7   : > { %v554_v30 = vor.u32 1.1754944e-38, %v553_v27  ;;  %vm552_vm6 = vcmp.eq.f32.partialorder %v551_v28, 8.507059e+37 }
  0xb9   : > { %559 = vrot.lane.b32.xlu0 %v511_v18, %s1629_s28 }
  0xbb   : > { %v1394_v22 = vpop.eup %1393 }
  0xbc   : > { %v543_v23 = vmul.f32 %v1394_v22, %v541_v21  ;;  %vm548_vm3 = vweird.f32 %v1394_v22 }
  0xbd   : > { %vm549_vm5 = vmor %vm547_vm4, %vm548_vm3 }
  0xbe   : > { %v544_v24 = vsub.f32 1.0, %v543_v23 }
  0xc0   : > { %v545_v25 = vmul.f32 %v1394_v22, %v544_v24 }
  0xc2   : > { %v546_v26 = vadd.f32 %v1394_v22, %v545_v25 }
  0xc4   : > { %v550_v29 = vsel %vm549_vm5, %v1394_v22, %v546_v26 }
  0xc5   : > { %v555_v32 = vsel %vm552_vm6, %v554_v30, %v550_v29 }
 0x123   : > { %v565_v31 = vpop.permute.xlu0 %564 }
 0x124   : > { %v567_v33 = vmul.f32 %v565_v31, %v555_v32 }
 0x126   : > { %569 = vrot.lane.b32.xlu1 %v567_v33, %s1629_s28 }
 0x12b   : > { %v560_v34 = vpop.permute.xlu0 %559 }
 0x12c   : > { %v562_v35 = vmul.f32 %v560_v34, %v555_v32 }
 0x198   : > { %v570_v36 = vpop.permute.xlu1 %569 }
 0x199   : > { %v572_v37 = vadd.f32 %v570_v36, %v562_v35 }
 0x19b   : > { %1395 = vtanh.f32 %v572_v37 }
 0x1a1   : > { %v1396_v38 = vpop.eup %1395 }
 0x1a2   : > { %575 = vrot.lane.b32.xlu1 %v1396_v38, %s1628_s26 }
 0x214   : > { %v576_v39 = vpop.permute.xlu1 %575 }
 0x215   : > { %v578_v40 = vmul.f32 %v576_v39, %v555_v32  ;;  %v460_v32 = vld [vmem:[%s1738_s24 + $0x18] sm:$0xff] }
 0x216   : > { %1294 = vmatmul.msk.f32.gmra.mxu0 %vm464_vm1, %v460_v32 }
 0x217   : > { %580 = vrot.lane.b32.xlu2 %v578_v40, %s1629_s28 }
 0x271   : > { %v581_v42 = vpop.permute.xlu2 %580 }
 0x272   : > { %583 = vst.msk [vmem:[%s1743_s27] sm:$0xff] %vm513_vm2, %v581_v42  ;;  %1297 = vmatmul.msk.f32.vlgmr.msra.gmra.mxu3 %vm513_vm2, %v581_v42 }
 0x293   : > { %v503_v36 = vpop.f32.mrf.mxu0 }
 0x2f5   : > { %v605_v45 = vpop.f32.mrf.mxu3 }
 0x2f6   : > { %v608_v46 = vadd.f32 %v605_v45, %v498_v44 }
 0x2f8   : > { %1397 = vtanh.f32 %v608_v46  ;;  %v1298_v48 = vmul.f32 -1.442695, %v608_v46 }
 0x2fa   : > { %1399 = vpow2.f32 %v1298_v48 }
 0x2fe   : > { %v1398_v47 = vpop.eup %1397 }
 0x2ff   : > { %631 = vrot.lane.b32.xlu2 %v1398_v47, %s1628_s26 }
 0x300   : > { %v1400_v49 = vpop.eup %1399 }
 0x301   : > { %v612_v50 = vadd.f32 1.0, %v1400_v49 }
 0x303   : > { %1401 = vrcp.f32 %v612_v50  ;;  %v624_v56 = vand.u32 2147483648, %v612_v50  ;;  %vm618_vm8 = vweird.f32 %v612_v50  ;;  %v622_v57 = vand.u32 2147483647, %v612_v50 }
 0x305   : > { %v625_v59 = vor.u32 1.1754944e-38, %v624_v56  ;;  %vm623_vm10 = vcmp.eq.f32.partialorder %v622_v57, 8.507059e+37 }
 0x309   : > { %v1402_v51 = vpop.eup %1401 }
 0x30a   : > { %v614_v52 = vmul.f32 %v1402_v51, %v612_v50  ;;  %vm619_vm7 = vweird.f32 %v1402_v51 }
 0x30b   : > { %vm620_vm9 = vmor %vm618_vm8, %vm619_vm7 }
 0x30c   : > { %v615_v53 = vsub.f32 1.0, %v614_v52 }
 0x30e   : > { %v616_v54 = vmul.f32 %v1402_v51, %v615_v53 }
 0x310   : > { %v617_v55 = vadd.f32 %v1402_v51, %v616_v54 }
 0x312   : > { %v621_v58 = vsel %vm620_vm9, %v1402_v51, %v617_v55 }
 0x313   : > { %v626_v61 = vsel %vm623_vm10, %v625_v59, %v621_v58 }
 0x314   : > { %v629_v63 = vmul.f32 %v626_v61, %v572_v37  ;;  %v504_v37 = vadd.f32 %v1771_v12, %v503_v36 }
 0x359   : > { %v632_v60 = vpop.permute.xlu2 %631 }
 0x35a   : > { %v634_v62 = vmul.f32 %v632_v60, %v626_v61 }
 0x35c   : > { %636 = vrot.lane.b32.xlu0 %v634_v62, %s1629_s28  ;;  %v801_v62 = vld [vmem:[#allocation8 + $0x18] sm:$0xff] }
 0x35d   : > { %875 = vmatpush.msra.mxu3 %v801_v62  ;;  %945 = vmatpush.msra.mxu1 %v801_v62 }
 0x3ce   : > { %v637_v0 = vpop.permute.xlu0 %636 }
 0x3cf   : > { %v639_v1 = vadd.f32 %v637_v0, %v629_v63  ;;  %v796_v63 = vld [vmem:[%s1907_s6 + $0x10] sm:$0xff] }
 0x3d0   : > { %v800_v0 = vld [vmem:[#allocation8 + $0x10] sm:$0xff] }
 0x3d1   : > { %1403 = vtanh.f32 %v639_v1  ;;  %876 = vmatpush.msra.mxu3 %v800_v0  ;;  %946 = vmatpush.msra.mxu1 %v800_v0 }
 0x3d7   : > { %v1404_v2 = vpop.eup %1403 }
 0x3d8   : > { %642 = vrot.lane.b32.xlu1 %v1404_v2, %s1628_s26  ;;  %v799_v2 = vld [vmem:[#allocation8 + $0x8] sm:$0xff] }
 0x3d9   : > { %877 = vmatpush.msra.mxu3 %v799_v2  ;;  %947 = vmatpush.msra.mxu1 %v799_v2 }
 0x44a   : > { %v643_v3 = vpop.permute.xlu1 %642 }
 0x44b   : > { %v645_v4 = vmul.f32 %v643_v3, %v626_v61  ;;  %v797_v61 = vld [vmem:[%s1907_s6 + $0x18] sm:$0xff]  ;;  %v794_v3 = vld [vmem:[%s1907_s6] sm:$0xff] }
 0x44c   : > { %834 = vmatpush.msra.mxu2 %v797_v61 }
 0x44d   : > { %647 = vrot.lane.b32.xlu2 %v645_v4, %s1629_s28  ;;  %v798_v4 = vld [vmem:[#allocation8] sm:$0xff] }
 0x44e   : > { %835 = vmatpush.msra.mxu2 %v796_v63  ;;  %878 = vmatpush.msra.mxu3 %v798_v4 }
 0x44f   : > { %948 = vmatpush.msra.mxu1 %v798_v4 }
 0x4a7   : > { %v648_v6 = vpop.permute.xlu2 %647 }
 0x4a8   : > { %1299 = vst.msk [vmem:[%s1743_s27 + $0x8] sm:$0xff] %vm513_vm2, %v648_v6  ;;  %1300 = vmatmul.msk.f32.vlgmr.msrb.gmra.mxu3 %vm513_vm2, %v648_v6 }
 0x4a9   : > { %1011 = vmatpush.msrb.mxu3 %v801_v62 }
 0x4ab   : > { %1012 = vmatpush.msrb.mxu3 %v800_v0 }
 0x4ad   : > { %1013 = vmatpush.msrb.mxu3 %v799_v2 }
 0x4af   : > { %1014 = vmatpush.msrb.mxu3 %v798_v4 }
 0x4b0   : > { %1310 = vmatmul.msk.f32.vlgmr.msra.gmra.mxu3 %vm513_vm2, %v856_v5 }
 0x52b   : > { %v673_v9 = vpop.f32.mrf.mxu3 }
 0x52c   : > { %v676_v10 = vadd.f32 %v673_v9, %v501_v8  ;;  %v803_v8 = vld [vmem:[%s1743_s27] sm:$0xff]  ;;  %v804_v9 = vld [vmem:[%s1743_s27 + $0x8] sm:$0xff] }
 0x52e   : > { %1405 = vtanh.f32 %v676_v10  ;;  %v1301_v13 = vmul.f32 -1.442695, %v676_v10 }
 0x530   : > { %1407 = vpow2.f32 %v1301_v13  ;;  %v1840_v13 = vld [vmem:[%s1909_s8] ss:$0 sm:$0xff] }
 0x534   : > { %v1406_v11 = vpop.eup %1405 }
 0x535   : > { %699 = vrot.lane.b32.xlu0 %v1406_v11, %s1628_s26 }
 0x536   : > { %v1408_v14 = vpop.eup %1407 }
 0x537   : > { %v680_v15 = vadd.f32 1.0, %v1408_v14 }
 0x539   : > { %1409 = vrcp.f32 %v680_v15  ;;  %v692_v21 = vand.u32 2147483648, %v680_v15  ;;  %vm686_vm12 = vweird.f32 %v680_v15  ;;  %v690_v22 = vand.u32 2147483647, %v680_v15 }
 0x53b   : > { %v693_v24 = vor.u32 1.1754944e-38, %v692_v21  ;;  %vm691_vm14 = vcmp.eq.f32.partialorder %v690_v22, 8.507059e+37 }
 0x53f   : > { %v1410_v16 = vpop.eup %1409 }
 0x540   : > { %v682_v17 = vmul.f32 %v1410_v16, %v680_v15  ;;  %vm687_vm11 = vweird.f32 %v1410_v16  ;;  %v880_v15 = vpop.f32.mrf.mxu3 }
 0x541   : > { %vm688_vm13 = vmor %vm686_vm12, %vm687_vm11 }
 0x542   : > { %v683_v18 = vsub.f32 1.0, %v682_v17 }
 0x544   : > { %v684_v19 = vmul.f32 %v1410_v16, %v683_v18 }
 0x546   : > { %v685_v20 = vadd.f32 %v1410_v16, %v684_v19 }
 0x548   : > { %v689_v23 = vsel %vm688_vm13, %v1410_v16, %v685_v20 }
 0x549   : > { %v694_v26 = vsel %vm691_vm14, %v693_v24, %v689_v23 }
 0x54a   : > { %v697_v28 = vmul.f32 %v694_v26, %v639_v1  ;;  %v795_v1 = vld [vmem:[%s1907_s6 + $0x8] sm:$0xff] }
 0x54b   : > { %836 = vmatpush.msra.mxu2 %v795_v1 }
 0x54d   : > { %837 = vmatpush.msra.mxu2 %v794_v3 }
 0x54e   : > { %1306 = vmatmul.msk.f32.vlgmr.msra.gmra.mxu2 %vm513_vm2, %v803_v8 }
 0x556   : > { %1307 = vmatmul.msk.f32.gmra.mxu2 %vm513_vm2, %v804_v9 }
 0x5a7   : > { %v700_v25 = vpop.permute.xlu0 %699 }
 0x5a8   : > { %v702_v27 = vmul.f32 %v700_v25, %v694_v26 }
 0x5aa   : > { %704 = vrot.lane.b32.xlu1 %v702_v27, %s1629_s28 }
 0x5d1   : > { %v839_v14 = vpop.f32.mrf.mxu2 }
 0x5d2   : > { %v840_v16 = vadd.f32 %v1840_v13, %v839_v14 }
 0x5d4   : > { %v883_v17 = vadd.f32 %v880_v15, %v840_v16 }
 0x5d6   : > { %v1311_v19 = vmul.f32 -1.442695, %v883_v17 }
 0x61c   : > { %v705_v29 = vpop.permute.xlu1 %704 }
 0x61d   : > { %v707_v30 = vadd.f32 %v705_v29, %v697_v28 }
 0x61f   : > { %1411 = vtanh.f32 %v707_v30 }
 0x625   : > { %v1412_v31 = vpop.eup %1411 }
 0x626   : > { %710 = vrot.lane.b32.xlu2 %v1412_v31, %s1628_s26 }
 0x680   : > { %v711_v33 = vpop.permute.xlu2 %710 }
 0x681   : > { %v713_v34 = vmul.f32 %v711_v33, %v694_v26 }
 0x683   : > { %715 = vrot.lane.b32.xlu0 %v713_v34, %s1629_s28 }
 0x6f5   : > { %v716_v35 = vpop.permute.xlu0 %715 }
 0x6f6   : > { %1302 = vst.msk [vmem:[%s1743_s27 + $0x10] sm:$0xff] %vm513_vm2, %v716_v35  ;;  %1303 = vmatmul.msk.f32.vlgmr.msrb.gmra.mxu1 %vm513_vm2, %v716_v35 }
 0x6f7   : > { %1077 = vmatpush.msrb.mxu1 %v801_v62 }
 0x6f9   : > { %1078 = vmatpush.msrb.mxu1 %v800_v0 }
 0x6fb   : > { %1079 = vmatpush.msrb.mxu1 %v799_v2 }
 0x6fd   : > { %1080 = vmatpush.msrb.mxu1 %v798_v4  ;;  %v805_v10 = vld [vmem:[%s1743_s27 + $0x10] sm:$0xff] }
 0x6fe   : > { %1308 = vmatmul.msk.f32.gmra.mxu2 %vm513_vm2, %v805_v10 }
 0x773   : > { %v741_v38 = vpop.f32.mrf.mxu1 }
 0x774   : > { %v744_v39 = vadd.f32 %v741_v38, %v504_v37 }
 0x776   : > { %1413 = vtanh.f32 %v744_v39  ;;  %v1304_v41 = vmul.f32 -1.442695, %v744_v39 }
 0x778   : > { %1415 = vpow2.f32 %v1304_v41 }
 0x77c   : > { %v1414_v40 = vpop.eup %1413 }
 0x77d   : > { %767 = vrot.lane.b32.xlu1 %v1414_v40, %s1628_s26 }
 0x77e   : > { %v1416_v42 = vpop.eup %1415 }
 0x77f   : > { %v748_v43 = vadd.f32 1.0, %v1416_v42  ;;  %v842_v42 = vpop.f32.mrf.mxu2 }
 0x781   : > { %1417 = vrcp.f32 %v748_v43  ;;  %v760_v49 = vand.u32 2147483648, %v748_v43  ;;  %vm754_vm0 = vweird.f32 %v748_v43  ;;  %v758_v12 = vand.u32 2147483647, %v748_v43 }
 0x783   : > { %v761_v51 = vor.u32 1.1754944e-38, %v760_v49  ;;  %vm759_vm3 = vcmp.eq.f32.partialorder %v758_v12, 8.507059e+37 }
 0x787   : > { %v1418_v44 = vpop.eup %1417  ;;  %v845_v5 = vpop.f32.mrf.mxu2 }
 0x788   : > { %v750_v45 = vmul.f32 %v1418_v44, %v748_v43  ;;  %vm755_vm15 = vweird.f32 %v1418_v44  ;;  %v843_v43 = vadd.f32 %v1840_v13, %v842_v42 }
 0x789   : > { %vm756_vm1 = vmor %vm754_vm0, %vm755_vm15 }
 0x78a   : > { %v751_v46 = vsub.f32 1.0, %v750_v45 }
 0x78c   : > { %v752_v47 = vmul.f32 %v1418_v44, %v751_v46 }
 0x78e   : > { %v753_v48 = vadd.f32 %v1418_v44, %v752_v47 }
 0x790   : > { %v757_v50 = vsel %vm756_vm1, %v1418_v44, %v753_v48 }
 0x791   : > { %v762_v53 = vsel %vm759_vm3, %v761_v51, %v757_v50 }
 0x792   : > { %v765_v55 = vmul.f32 %v762_v53, %v707_v30 }
 0x7ef   : > { %v768_v52 = vpop.permute.xlu1 %767 }
 0x7f0   : > { %v770_v54 = vmul.f32 %v768_v52, %v762_v53 }
 0x7f2   : > { %772 = vrot.lane.b32.xlu2 %v770_v54, %s1629_s28 }
 0x84c   : > { %v773_v56 = vpop.permute.xlu2 %772 }
 0x84d   : > { %v1807_v57 = vadd.f32 %v773_v56, %v765_v55 }
 0x84f   : > { %1419 = vtanh.f32 %v1807_v57 }
 0x850   : > { %1421 = vtanh.f32 %v883_v17 }
 0x851   : > { %1423 = vpow2.f32 %v1311_v19 }
 0x855   : > { %v1420_v58 = vpop.eup %1419 }
 0x856   : > { %778 = vrot.lane.b32.xlu0 %v1420_v58, %s1628_s26  ;;  %v1422_v18 = vpop.eup %1421 }
 0x857   : > { %910 = vrot.lane.b32.xlu2 %v1422_v18, %s1628_s26  ;;  %v1424_v20 = vpop.eup %1423 }
 0x858   : > { %v887_v21 = vadd.f32 1.0, %v1424_v20 }
 0x85a   : > { %1425 = vrcp.f32 %v887_v21  ;;  %v899_v27 = vand.u32 2147483648, %v887_v21  ;;  %vm893_vm5 = vweird.f32 %v887_v21  ;;  %v897_v28 = vand.u32 2147483647, %v887_v21 }
 0x85c   : > { %v900_v30 = vor.u32 1.1754944e-38, %v899_v27  ;;  %vm898_vm7 = vcmp.eq.f32.partialorder %v897_v28, 8.507059e+37 }
 0x85e   : > { %905 = vrot.lane.b32.xlu0 %v858_v7, %s1629_s28 }
 0x860   : > { %v1426_v22 = vpop.eup %1425 }
 0x861   : > { %v889_v23 = vmul.f32 %v1426_v22, %v887_v21  ;;  %vm894_vm4 = vweird.f32 %v1426_v22 }
 0x862   : > { %vm895_vm6 = vmor %vm893_vm5, %vm894_vm4 }
 0x863   : > { %v890_v24 = vsub.f32 1.0, %v889_v23 }
 0x865   : > { %v891_v25 = vmul.f32 %v1426_v22, %v890_v24 }
 0x867   : > { %v892_v26 = vadd.f32 %v1426_v22, %v891_v25 }
 0x869   : > { %v896_v29 = vsel %vm895_vm6, %v1426_v22, %v892_v26 }
 0x86a   : > { %v901_v31 = vsel %vm898_vm7, %v900_v30, %v896_v29 }
 0x8b1   : > { %v911_v32 = vpop.permute.xlu2 %910 }
 0x8b2   : > { %v913_v33 = vmul.f32 %v911_v32, %v901_v31 }
 0x8c8   : > { %v779_v59 = vpop.permute.xlu0 %778 }
 0x8c9   : > { %v781_v60 = vmul.f32 %v779_v59, %v762_v53 }
 0x8cb   : > { %783 = vrot.lane.b32.xlu1 %v781_v60, %s1629_s28 }
 0x8d0   : > { %v906_v34 = vpop.permute.xlu0 %905 }
 0x8d1   : > { %v908_v35 = vmul.f32 %v906_v34, %v901_v31 }
 0x8d3   : > { %915 = vrot.lane.b32.xlu1 %v913_v33, %s1629_s28 }
 0x93d   : > { %v784_v6 = vpop.permute.xlu1 %783 }
 0x93e   : > { %1305 = vst.msk [vmem:[%s1743_s27 + $0x18] sm:$0xff] %vm513_vm2, %v784_v6 }
 0x93f   : > { %788 = vst.msk [vmem:[#allocation9] sm:$0xff] %vm513_vm2, %v784_v6  ;;  %v846_v6 = vadd.f32 %v1840_v13, %v845_v5 }
 0x945   : > { %v806_v11 = vld [vmem:[%s1743_s27 + $0x18] sm:$0xff]  ;;  %v916_v36 = vpop.permute.xlu1 %915 }
 0x946   : > { %1309 = vmatmul.msk.f32.gmra.mxu2 %vm513_vm2, %v806_v11  ;;  %v918_v37 = vadd.f32 %v916_v36, %v908_v35 }
 0x948   : > { %1427 = vtanh.f32 %v918_v37 }
 0x94e   : > { %v1428_v38 = vpop.eup %1427 }
 0x94f   : > { %921 = vrot.lane.b32.xlu2 %v1428_v38, %s1628_s26 }
 0x9a9   : > { %v922_v39 = vpop.permute.xlu2 %921 }
 0x9aa   : > { %v924_v40 = vmul.f32 %v922_v39, %v901_v31 }
 0x9ac   : > { %926 = vrot.lane.b32.xlu0 %v924_v40, %s1629_s28 }
 0x9c9   : > { %v848_v34 = vpop.f32.mrf.mxu2 }
 0x9ca   : > { %v849_v35 = vadd.f32 %v1840_v13, %v848_v34 }
 0xa1e   : > { %v927_v41 = vpop.permute.xlu0 %926 }
 0xa1f   : > { %929 = vst.msk [vmem:[%s1743_s27] sm:$0xff] %vm513_vm2, %v927_v41  ;;  %1312 = vmatmul.msk.f32.vlgmr.msra.gmra.mxu1 %vm513_vm2, %v927_v41 }
 0xa9c   : > { %v950_v44 = vpop.f32.mrf.mxu1 }
 0xa9d   : > { %v953_v45 = vadd.f32 %v950_v44, %v843_v43 }
 0xa9f   : > { %1429 = vtanh.f32 %v953_v45  ;;  %v1313_v47 = vmul.f32 -1.442695, %v953_v45 }
 0xaa1   : > { %1431 = vpow2.f32 %v1313_v47 }
 0xaa5   : > { %v1430_v46 = vpop.eup %1429 }
 0xaa6   : > { %976 = vrot.lane.b32.xlu1 %v1430_v46, %s1628_s26 }
 0xaa7   : > { %v1432_v48 = vpop.eup %1431 }
 0xaa8   : > { %v957_v49 = vadd.f32 1.0, %v1432_v48 }
 0xaaa   : > { %1433 = vrcp.f32 %v957_v49  ;;  %v969_v54 = vand.u32 2147483648, %v957_v49  ;;  %vm963_vm9 = vweird.f32 %v957_v49  ;;  %v967_v55 = vand.u32 2147483647, %v957_v49 }
 0xaac   : > { %v970_v58 = vor.u32 1.1754944e-38, %v969_v54  ;;  %vm968_vm11 = vcmp.eq.f32.partialorder %v967_v55, 8.507059e+37 }
 0xab0   : > { %v1434_v12 = vpop.eup %1433 }
 0xab1   : > { %v959_v50 = vmul.f32 %v1434_v12, %v957_v49  ;;  %vm964_vm8 = vweird.f32 %v1434_v12 }
 0xab2   : > { %vm965_vm10 = vmor %vm963_vm9, %vm964_vm8 }
 0xab3   : > { %v960_v51 = vsub.f32 1.0, %v959_v50 }
 0xab5   : > { %v961_v52 = vmul.f32 %v1434_v12, %v960_v51 }
 0xab7   : > { %v962_v53 = vadd.f32 %v1434_v12, %v961_v52 }
 0xab9   : > { %v966_v56 = vsel %vm965_vm10, %v1434_v12, %v962_v53 }
 0xaba   : > { %v971_v60 = vsel %vm968_vm11, %v970_v58, %v966_v56 }
 0xabb   : > { %v974_v62 = vmul.f32 %v971_v60, %v918_v37 }
 0xb18   : > { %v977_v59 = vpop.permute.xlu1 %976 }
 0xb19   : > { %v979_v61 = vmul.f32 %v977_v59, %v971_v60 }
 0xb1b   : > { %981 = vrot.lane.b32.xlu2 %v979_v61, %s1629_s28 }
 0xb75   : > { %v982_v63 = vpop.permute.xlu2 %981 }
 0xb76   : > { %v984_v0 = vadd.f32 %v982_v63, %v974_v62 }
 0xb78   : > { %1435 = vtanh.f32 %v984_v0 }
 0xb7e   : > { %v1436_v1 = vpop.eup %1435 }
 0xb7f   : > { %987 = vrot.lane.b32.xlu0 %v1436_v1, %s1628_s26 }
 0xbf1   : > { %v988_v2 = vpop.permute.xlu0 %987 }
 0xbf2   : > { %v990_v3 = vmul.f32 %v988_v2, %v971_v60 }
 0xbf4   : > { %992 = vrot.lane.b32.xlu1 %v990_v3, %s1629_s28 }
 0xc66   : > { %v993_v4 = vpop.permute.xlu1 %992 }
 0xc67   : > { %1314 = vst.msk [vmem:[%s1743_s27 + $0x8] sm:$0xff] %vm513_vm2, %v993_v4  ;;  %1315 = vmatmul.msk.f32.vlgmr.msrb.gmra.mxu3 %vm513_vm2, %v993_v4 }
 0xcea   : > { %v1016_v7 = vpop.f32.mrf.mxu3 }
 0xceb   : > { %v1019_v8 = vadd.f32 %v1016_v7, %v846_v6 }
 0xced   : > { %1437 = vtanh.f32 %v1019_v8  ;;  %v1316_v10 = vmul.f32 -1.442695, %v1019_v8 }
 0xcef   : > { %1439 = vpow2.f32 %v1316_v10 }
 0xcf3   : > { %v1438_v9 = vpop.eup %1437 }
 0xcf4   : > { %1042 = vrot.lane.b32.xlu2 %v1438_v9, %s1628_s26 }
 0xcf5   : > { %v1440_v11 = vpop.eup %1439 }
 0xcf6   : > { %v1023_v14 = vadd.f32 1.0, %v1440_v11 }
 0xcf8   : > { %1441 = vrcp.f32 %v1023_v14  ;;  %v1035_v20 = vand.u32 2147483648, %v1023_v14  ;;  %vm1029_vm13 = vweird.f32 %v1023_v14  ;;  %v1033_v21 = vand.u32 2147483647, %v1023_v14 }
 0xcfa   : > { %v1036_v23 = vor.u32 1.1754944e-38, %v1035_v20  ;;  %vm1034_vm15 = vcmp.eq.f32.partialorder %v1033_v21, 8.507059e+37 }
 0xcfe   : > { %v1442_v15 = vpop.eup %1441 }
 0xcff   : > { %v1025_v16 = vmul.f32 %v1442_v15, %v1023_v14  ;;  %vm1030_vm12 = vweird.f32 %v1442_v15 }
 0xd00   : > { %vm1031_vm14 = vmor %vm1029_vm13, %vm1030_vm12 }
 0xd01   : > { %v1026_v17 = vsub.f32 1.0, %v1025_v16 }
 0xd03   : > { %v1027_v18 = vmul.f32 %v1442_v15, %v1026_v17 }
 0xd05   : > { %v1028_v19 = vadd.f32 %v1442_v15, %v1027_v18 }
 0xd07   : > { %v1032_v22 = vsel %vm1031_vm14, %v1442_v15, %v1028_v19 }
 0xd08   : > { %v1037_v25 = vsel %vm1034_vm15, %v1036_v23, %v1032_v22 }
 0xd09   : > { %v1040_v27 = vmul.f32 %v1037_v25, %v984_v0 }
 0xd4e   : > { %v1043_v24 = vpop.permute.xlu2 %1042 }
 0xd4f   : > { %v1045_v26 = vmul.f32 %v1043_v24, %v1037_v25 }
 0xd51   : > { %1047 = vrot.lane.b32.xlu0 %v1045_v26, %s1629_s28 }
 0xdc3   : > { %v1048_v28 = vpop.permute.xlu0 %1047 }
 0xdc4   : > { %v1050_v29 = vadd.f32 %v1048_v28, %v1040_v27 }
 0xdc6   : > { %1443 = vtanh.f32 %v1050_v29 }
 0xdcc   : > { %v1444_v30 = vpop.eup %1443 }
 0xdcd   : > { %1053 = vrot.lane.b32.xlu1 %v1444_v30, %s1628_s26 }
 0xe3f   : > { %v1054_v31 = vpop.permute.xlu1 %1053 }
 0xe40   : > { %v1056_v32 = vmul.f32 %v1054_v31, %v1037_v25 }
 0xe42   : > { %1058 = vrot.lane.b32.xlu2 %v1056_v32, %s1629_s28 }
 0xe9c   : > { %v1059_v33 = vpop.permute.xlu2 %1058 }
 0xe9d   : > { %1317 = vst.msk [vmem:[%s1743_s27 + $0x10] sm:$0xff] %vm513_vm2, %v1059_v33  ;;  %1318 = vmatmul.msk.f32.vlgmr.msrb.gmra.mxu1 %vm513_vm2, %v1059_v33 }
 0xf1a   : > { %v1082_v36 = vpop.f32.mrf.mxu1 }
 0xf1b   : > { %v1085_v37 = vadd.f32 %v1082_v36, %v849_v35 }
 0xf1d   : > { %1445 = vtanh.f32 %v1085_v37  ;;  %v1319_v39 = vmul.f32 -1.442695, %v1085_v37 }
 0xf1f   : > { %1447 = vpow2.f32 %v1319_v39 }
 0xf23   : > { %v1446_v38 = vpop.eup %1445 }
 0xf24   : > { %1108 = vrot.lane.b32.xlu0 %v1446_v38, %s1628_s26 }
 0xf25   : > { %v1448_v40 = vpop.eup %1447 }
 0xf26   : > { %v1089_v41 = vadd.f32 1.0, %v1448_v40 }
 0xf28   : > { %1449 = vrcp.f32 %v1089_v41  ;;  %v1101_v46 = vand.u32 2147483648, %v1089_v41  ;;  %vm1095_vm1 = vweird.f32 %v1089_v41  ;;  %v1099_v47 = vand.u32 2147483647, %v1089_v41 }
 0xf2a   : > { %v1102_v49 = vor.u32 1.1754944e-38, %v1101_v46  ;;  %vm1100_vm4 = vcmp.eq.f32.partialorder %v1099_v47, 8.507059e+37 }
 0xf2c   : > { %790 = vrot.lane.b32.xlu0 %v1807_v57, %s1630_s21 }
 0xf2e   : > { %v1450_v42 = vpop.eup %1449 }
 0xf2f   : > { %v1091_v43 = vmul.f32 %v1450_v42, %v1089_v41  ;;  %vm1096_vm0 = vweird.f32 %v1450_v42 }
 0xf30   : > { %vm1097_vm3 = vmor %vm1095_vm1, %vm1096_vm0 }
 0xf31   : > { %v1092_v44 = vsub.f32 1.0, %v1091_v43 }
 0xf33   : > { %v1093_v45 = vmul.f32 %v1450_v42, %v1092_v44 }
 0xf35   : > { %v1094_v13 = vadd.f32 %v1450_v42, %v1093_v45 }
 0xf37   : > { %v1098_v48 = vsel %vm1097_vm3, %v1450_v42, %v1094_v13 }
 0xf38   : > { %v1103_v57 = vsel %vm1100_vm4, %v1102_v49, %v1098_v48 }
 0xf39   : > { %v1106_v52 = vmul.f32 %v1103_v57, %v1050_v29 }
 0xf96   : > { %v1109_v12 = vpop.permute.xlu0 %1108 }
 0xf97   : > { %v1111_v50 = vmul.f32 %v1109_v12, %v1103_v57 }
 0xf99   : > { %1113 = vrot.lane.b32.xlu1 %v1111_v50, %s1629_s28 }
 0xf9e   : > { %v791_v51 = vpop.permute.xlu0 %790 }
 0xf9f   : > { %793 = vst.msk [vmem:[#allocation10] sm:$0xff] %vm513_vm2, %v791_v51 }
0x100b   : > { %v1114_v53 = vpop.permute.xlu1 %1113 }
0x100c   : > { %v1116_v54 = vadd.f32 %v1114_v53, %v1106_v52 }
0x100e   : > { %1451 = vtanh.f32 %v1116_v54 }
0x1014   : > { %v1452_v55 = vpop.eup %1451 }
0x1015   : > { %1119 = vrot.lane.b32.xlu2 %v1452_v55, %s1628_s26  ;;  %s1632_s26 = smov 128  }
0x101d   : > { %1130 = vrot.lane.b32.xlu2 %v1116_v54, %s1630_s21 }
0x106f   : > { %v1120_v56 = vpop.permute.xlu2 %1119 }
0x1070   : > { %v1122_v58 = vmul.f32 %v1120_v56, %v1103_v57 }
0x1072   : > { %1124 = vrot.lane.b32.xlu1 %v1122_v58, %s1629_s28  ;;  %s1634_s28 = smov [#allocation9]  }
0x1073   : > { %s1148_s12 = sshll.u32 %s1634_s28, 4  ;;  %s1149_s12 = int_to_ptr.vmem [resolvable:$true] %s1148_s12 }
0x1077   : > { %v1131_v59 = vpop.permute.xlu2 %1130 }
0x1078   : > { %1133 = vst.msk [vmem:[#allocation10 + $0x8] sm:$0xff] %vm513_vm2, %v1131_v59 }
0x1079   : > { %1342 = dma.vmem_to_hbm [thread:$0]  (%p1363_p8), %s1163_s22, 256, %s1165_s29, [#allocation11], %s1632_s26, %s1632_s26, %s1633_s30  }
0x10e4   : > { %v1125_v60 = vpop.permute.xlu1 %1124 }
0x10e5   : > { %1320 = vst.msk [vmem:[%s1743_s27 + $0x18] sm:$0xff] %vm513_vm2, %v1125_v60 }
0x10e6   : > { %1128 = vst.msk [vmem:[#allocation9 + $0x8] sm:$0xff] %vm513_vm2, %v1125_v60 }
0x10e7   : > { %1340 = dma.vmem_to_hbm [thread:$0]  (%p1363_p8), %s1149_s12, 256, %s1151_s15, [#allocation5], %s1632_s26, %s1632_s26, %s1633_s30  }
0x10e8   : > { %1612 = dma.done.wait (%p1363_p8), [#allocation5], 256  }
0x10e9   : > { %1614 = vsyncadd (%p1363_p8), [#allocation5], 4294967040 }
0x10ea   : > { %1616 = dma.done.wait (%p1363_p8), [#allocation11], 256  }
0x10eb   : > { %1618 = vsyncadd (%p1363_p8), [#allocation11], 4294967040 }
0x10ec PF: > { %s26_s17 = sadd.s32 1, %s1621_s17  }
0x10ed   : > { %p23_p9 = scmp.ge.s32.totalorder %s26_s17, 4  }
0x10ef   :  { %25 = sbr.rel (!%p23_p9) target bundleno = 4 (0x4), region = 128 }
0x10f4   :  { %1194 = vsyncpa [#allocation4], 1 }
0x10f5   :  { %1196 = vsyncpa [#allocation4 + $0x1], 1 }
0x10f6   :  { %1197 = vsyncpa [#allocation7], 1 }
0x10f7   :  { %1198 = vsyncpa [#allocation5], 1 }
0x10f8   :  { %1200 = vsyncpa [#allocation5 + $0x1], 1 }
0x10f9   :  { %1201 = vsyncpa [#allocation11], 1 }

</bundles_post_ra>
